<compile_context>
chip_gen: v6e
topology: v6e:2x2x1
jax: 0.10.0
libtpu: 0.0.40
codegen_flags: <defaults>
</compile_context>

<pallas_src>
import functools

import jax
import jax.numpy as jnp
from jax.experimental import pallas as pl
from jax.experimental.pallas import tpu as pltpu


_LANE = 128
_ROW_PAD = 512                            # keep row/reduction tiles >= 256
_VMEM_LIMIT_BYTES = 48 * 1024 * 1024      # safe on v5e/v6e (128 MiB) and v7x (64 MiB)
_VMEM_BUDGET_BYTES = 36 * 1024 * 1024     # planning budget (headroom under the limit)


def _round_up(x, m):
    return ((x + m - 1) // m) * m


def _pad2d(a, rows, cols):
    return jnp.pad(a, ((0, rows - a.shape[0]), (0, cols - a.shape[1])))


def _pick_tile_m(n_pad):
    """Largest of {512,256,128} dividing n_pad while keeping >=2 grid points on
    the 'parallel' row axis (v7x megacore has 2 TensorCores)."""
    for t in (512, 256, 128):
        if n_pad % t == 0 and n_pad // t >= 2:
            return t
    return 128  # unreachable: n_pad is a multiple of 512


def _pick_tile_k(n_pad, tile_m):
    """Largest reduction tile dividing n_pad with a modest adj double-buffer."""
    for t in (2048, 1024, 512, 256, 128):
        if n_pad % t == 0 and 2 * tile_m * t * 2 <= 8 * 1024 * 1024:
            return t
    return tile_m


def _pick_tile_kf(k_pad):
    """Reduction tile for the support matmul's feature axis."""
    for t in (2048, 1024, 512, 256, 128):
        if k_pad % t == 0:
            return t
    return k_pad


def _s_resident_fits(n, n_out, tile_m, tile_k, extra_bytes=0):
    """Can the full support matrix s (bf16) live in VMEM for the aggregation?
    Conservatively budgets double-buffering for every input block."""
    bpe = 2  # bf16 operands
    adj_bufs = 2 * tile_m * tile_k * bpe
    s_bufs = 2 * n * n_out * bpe
    acc = tile_m * n_out * 4
    out_bufs = 2 * tile_m * n_out * 4
    total = adj_bufs + s_bufs + acc + out_bufs + extra_bytes
    return total <= _VMEM_BUDGET_BYTES


# ----------------------------------------------------------------------------
# Kernel 1: row + K tiled dense matmul  s = x @ W  (GraphConvolution "support")
# ----------------------------------------------------------------------------
def _support_kernel(x_ref, w_ref, s_ref, acc_ref):
    kf = pl.program_id(1)
    part = jnp.dot(x_ref[...], w_ref[...], preferred_element_type=jnp.float32)

    @pl.when(kf == 0)
    def _():
        acc_ref[...] = part            # direct assign: no zero-init store+read

    @pl.when(kf > 0)
    def _():
        acc_ref[...] += part

    @pl.when(kf == pl.num_programs(1) - 1)
    def _():
        s_ref[...] = acc_ref[...].astype(s_ref.dtype)


def _support_matmul(x, w, *, tile_m, out_dtype):
    m, kdim = x.shape
    n_out = w.shape[1]
    tile_kf = _pick_tile_kf(kdim)
    grid = (m // tile_m, kdim // tile_kf)
    bytes_accessed = (
        x.size * x.dtype.itemsize
        + grid[0] * w.size * w.dtype.itemsize
        + m * n_out * jnp.dtype(out_dtype).itemsize
    )
    return pl.pallas_call(
        _support_kernel,
        out_shape=jax.ShapeDtypeStruct((m, n_out), out_dtype),
        grid_spec=pltpu.PrefetchScalarGridSpec(
            num_scalar_prefetch=0,
            grid=grid,
            in_specs=[
                pl.BlockSpec((tile_m, tile_kf), lambda i, kf: (i, kf)),
                pl.BlockSpec((tile_kf, n_out), lambda i, kf: (kf, 0)),
            ],
            out_specs=pl.BlockSpec((tile_m, n_out), lambda i, kf: (i, 0)),
            scratch_shapes=[pltpu.VMEM((tile_m, n_out), jnp.float32)],
        ),
        compiler_params=pltpu.CompilerParams(
            dimension_semantics=("parallel", "arbitrary"),
            vmem_limit_bytes=_VMEM_LIMIT_BYTES,
        ),
        cost_estimate=pl.CostEstimate(
            flops=2 * m * kdim * n_out,
            transcendentals=0,
            bytes_accessed=int(bytes_accessed),
        ),
    )(x, w)


# ----------------------------------------------------------------------------
# Kernel 2: row/K-tiled aggregation  adj @ s + b  (+ optional fused next-layer
# support matmul in the epilogue).  s may be VMEM-resident (constant index
# map, sliced per K step) or streamed per K block.
# ----------------------------------------------------------------------------
def _agg_accumulate(adj_ref, s_ref, acc_ref, resident_s, tile_k):
    k = pl.program_id(1)
    if resident_s:
        start = pl.multiple_of(k * tile_k, tile_k)
        s_blk = s_ref[pl.ds(start, tile_k), :]
    else:
        s_blk = s_ref[...]
    part = jnp.dot(adj_ref[...], s_blk, preferred_element_type=jnp.float32)

    @pl.when(k == 0)
    def _():
        acc_ref[...] = part            # direct assign: no zero-init store+read

    @pl.when(k > 0)
    def _():
        acc_ref[...] += part


def _make_fused_agg_kernel(resident_s, tile_k):
    """Layer-1 aggregation with fused layer-2 support:
       h  = relu(adj @ s1 + b1)   (f32 output, = gft_list[0])
       s2 = h.bf16 @ W2           (bf16 output, next layer's support)"""

    def kernel(adj_ref, s_ref, b_ref, w_next_ref, h_ref, s_next_ref, acc_ref):
        _agg_accumulate(adj_ref, s_ref, acc_ref, resident_s, tile_k)

        @pl.when(pl.program_id(1) == pl.num_programs(1) - 1)
        def _():
            h = jnp.maximum(acc_ref[...] + b_ref[...], 0.0)  # f32 epilogue
            h_ref[...] = h.astype(h_ref.dtype)
            s_next_ref[...] = jnp.dot(
                h.astype(w_next_ref.dtype), w_next_ref[...],
                preferred_element_type=jnp.float32,
            ).astype(s_next_ref.dtype)

    return kernel


def _make_agg_kernel(activation, resident_s, tile_k):
    def kernel(adj_ref, s_ref, b_ref, o_ref, acc_ref):
        _agg_accumulate(adj_ref, s_ref, acc_ref, resident_s, tile_k)

        @pl.when(pl.program_id(1) == pl.num_programs(1) - 1)
        def _():
            o_ref[...] = activation(acc_ref[...] + b_ref[...]).astype(o_ref.dtype)

    return kernel


def _aggregate_fused(adj, s1, b1, w2, *, tile_m, tile_k, h_dtype, s2_dtype):
    n = adj.shape[0]
    nhid = s1.shape[1]
    ncls = w2.shape[1]
    extra = 2 * nhid * ncls * 2 + 2 * tile_m * ncls * 2  # resident W2 + s2 bufs
    resident_s = _s_resident_fits(n, nhid, tile_m, tile_k, extra_bytes=extra)
    grid = (n // tile_m, n // tile_k)

    if resident_s:
        s_spec = pl.BlockSpec((n, nhid), lambda i, k: (0, 0))     # fetched once
        s_reads = s1.size * s1.dtype.itemsize
    else:
        s_spec = pl.BlockSpec((tile_k, nhid), lambda i, k: (k, 0))
        s_reads = grid[0] * s1.size * s1.dtype.itemsize

    bytes_accessed = (
        adj.size * adj.dtype.itemsize
        + s_reads
        + w2.size * w2.dtype.itemsize
        + n * nhid * jnp.dtype(h_dtype).itemsize
        + n * ncls * jnp.dtype(s2_dtype).itemsize
    )
    return pl.pallas_call(
        _make_fused_agg_kernel(resident_s, tile_k),
        out_shape=(jax.ShapeDtypeStruct((n, nhid), h_dtype),
                   jax.ShapeDtypeStruct((n, ncls), s2_dtype)),
        grid_spec=pltpu.PrefetchScalarGridSpec(
            num_scalar_prefetch=0,
            grid=grid,
            in_specs=[
                pl.BlockSpec((tile_m, tile_k), lambda i, k: (i, k)),
                s_spec,
                pl.BlockSpec((1, nhid), lambda i, k: (0, 0)),
                pl.BlockSpec((nhid, ncls), lambda i, k: (0, 0)),
            ],
            out_specs=[
                pl.BlockSpec((tile_m, nhid), lambda i, k: (i, 0)),
                pl.BlockSpec((tile_m, ncls), lambda i, k: (i, 0)),
            ],
            scratch_shapes=[pltpu.VMEM((tile_m, nhid), jnp.float32)],
        ),
        compiler_params=pltpu.CompilerParams(
            dimension_semantics=("parallel", "arbitrary"),
            vmem_limit_bytes=_VMEM_LIMIT_BYTES,
        ),
        cost_estimate=pl.CostEstimate(
            flops=2 * n * n * nhid + 2 * n * nhid * ncls,
            transcendentals=0,
            bytes_accessed=int(bytes_accessed),
        ),
    )(adj, s1, b1, w2)


def _aggregate(adj, s, b, activation, *, tile_m, tile_k, out_dtype,
               n_transcendentals=0):
    n = adj.shape[0]
    n_out = s.shape[1]
    resident_s = _s_resident_fits(n, n_out, tile_m, tile_k)
    grid = (n // tile_m, n // tile_k)

    if resident_s:
        s_spec = pl.BlockSpec((n, n_out), lambda i, k: (0, 0))    # fetched once
        s_reads = s.size * s.dtype.itemsize
    else:
        s_spec = pl.BlockSpec((tile_k, n_out), lambda i, k: (k, 0))
        s_reads = grid[0] * s.size * s.dtype.itemsize

    bytes_accessed = (
        adj.size * adj.dtype.itemsize
        + s_reads
        + n * n_out * jnp.dtype(out_dtype).itemsize
    )
    return pl.pallas_call(
        _make_agg_kernel(activation, resident_s, tile_k),
        out_shape=jax.ShapeDtypeStruct((n, n_out), out_dtype),
        grid_spec=pltpu.PrefetchScalarGridSpec(
            num_scalar_prefetch=0,
            grid=grid,
            in_specs=[
                pl.BlockSpec((tile_m, tile_k), lambda i, k: (i, k)),
                s_spec,
                pl.BlockSpec((1, n_out), lambda i, k: (0, 0)),
            ],
            out_specs=pl.BlockSpec((tile_m, n_out), lambda i, k: (i, 0)),
            scratch_shapes=[pltpu.VMEM((tile_m, n_out), jnp.float32)],
        ),
        compiler_params=pltpu.CompilerParams(
            dimension_semantics=("parallel", "arbitrary"),
            vmem_limit_bytes=_VMEM_LIMIT_BYTES,
        ),
        cost_estimate=pl.CostEstimate(
            flops=2 * n * n * n_out,
            transcendentals=int(n_transcendentals),
            bytes_accessed=int(bytes_accessed),
        ),
    )(adj, s, b)


# ----------------------------------------------------------------------------
# Full 2-layer GCN forward
# ----------------------------------------------------------------------------
@functools.partial(jax.jit, static_argnames=("compute_dtype",))
def gcn2_forward(x, adj, w1, b1, w2, b2, compute_dtype=jnp.bfloat16):
    """GCN (n_layer=2) forward.

    x:   (N, nfeat) node features
    adj: (N, N) dense row-normalized adjacency
    w1:  (nfeat, nhid),  b1: (1, nhid)
    w2:  (nhid, nclass), b2: (1, nclass)
    Returns (out (N, nclass) f32, hidden (N, nhid) f32) = (x, gft_list[0]).
    """
    n, nfeat = x.shape
    nhid = w1.shape[1]
    nclass = w2.shape[1]

    # Lane-dense padding: N rounded to 512 (big tiles + >=2 parallel grid
    # points), feature dims rounded to 128.
    n_pad = _round_up(n, _ROW_PAD)
    nfeat_p = _round_up(nfeat, _LANE)
    nhid_p = _round_up(nhid, _LANE)
    nclass_p = _round_up(nclass, _LANE)

    tile_m = _pick_tile_m(n_pad)
    tile_k = _pick_tile_k(n_pad, tile_m)

    # Zero-padding keeps the math exact on the real rows/cols:
    #   * padded adj COLUMNS are zero, so padded rows of s/h/s2 never feed real
    #     output rows;
    #   * padded adj ROWS are zero, so padded output rows equal act(bias)
    #     (nonzero!) but are sliced off below;
    #   * padded W/b columns are zero, so padded feature columns stay harmless.
    x_p = _pad2d(x, n_pad, nfeat_p).astype(compute_dtype)
    adj_p = _pad2d(adj, n_pad, n_pad).astype(compute_dtype)
    w1_p = _pad2d(w1, nfeat_p, nhid_p).astype(compute_dtype)
    b1_p = _pad2d(b1, 1, nhid_p).astype(jnp.float32)
    w2_p = _pad2d(w2, nhid_p, nclass_p).astype(compute_dtype)
    b2_p = _pad2d(b2, 1, nclass_p).astype(jnp.float32)

    # ---- layer 1 support: s1 = x @ W1 ---------------------------------------
    s1 = _support_matmul(x_p, w1_p, tile_m=tile_m, out_dtype=compute_dtype)

    # ---- layer 1 aggregate + fused layer 2 support ---------------------------
    #   h  = relu(adj @ s1 + b1)   (f32, gft_list[0])
    #   s2 = h.bf16 @ W2           (fused into the epilogue; no extra HBM pass)
    h1, s2 = _aggregate_fused(adj_p, s1, b1_p, w2_p, tile_m=tile_m,
                              tile_k=tile_k, h_dtype=jnp.float32,
                              s2_dtype=compute_dtype)

    # ---- layer 2 aggregate: out = sigmoid(adj @ s2 + b2) --------------------
    out = _aggregate(adj_p, s2, b2_p, jax.nn.sigmoid, tile_m=tile_m,
                     tile_k=tile_k, out_dtype=jnp.float32,
                     n_transcendentals=n_pad * nclass_p)

    # Slice off padding before returning.
    return out[:n, :nclass], h1[:n, :nhid]


def gcn2_reference(x, adj, w1, b1, w2, b2):
    """Plain-JAX f32 reference mirroring the PyTorch module."""
    h = jax.nn.relu(adj @ (x @ w1) + b1)
    out = jax.nn.sigmoid(adj @ (h @ w2) + b2)
    return out, h


def init_graph_conv_params(key, fan_in, fan_out):
    """GraphConvolution init: uniform(-stdv, stdv), stdv = 1/sqrt(fan_out)."""
    stdv = 1.0 / jnp.sqrt(jnp.asarray(fan_out, jnp.float32))
    kw, kb = jax.random.split(key)
    w = jax.random.uniform(kw, (fan_in, fan_out), jnp.float32, -stdv, stdv)
    b = jax.random.uniform(kb, (1, fan_out), jnp.float32, -stdv, stdv)
    return w, b


if __name__ == "__main__":
    # Small shapes consistent with the module's n_layer=2 branch.
    n_nodes, nfeat, nhid, nclass = 8, 16, 32, 4

    key = jax.random.PRNGKey(0)
    kx, kadj, k1, k2 = jax.random.split(key, 4)

    # Node features.
    x = jax.random.normal(kx, (n_nodes, nfeat), jnp.float32)

    # Dense symmetric row-normalized adjacency with self-loops.
    a = (jax.random.uniform(kadj, (n_nodes, n_nodes)) > 0.5).astype(jnp.float32)
    a = jnp.maximum(a, a.T) + jnp.eye(n_nodes, dtype=jnp.float32)
    adj = a / jnp.sum(a, axis=1, keepdims=True)

    # GraphConvolution parameters (gc1: nfeat->nhid, gc2: nhid->nclass).
    w1, b1 = init_graph_conv_params(k1, nfeat, nhid)
    w2, b2 = init_graph_conv_params(k2, nhid, nclass)

    out, hidden = gcn2_forward(x, adj, w1, b1, w2, b2)
    jax.block_until_ready((out, hidden))

    # Correctness vs. the f32 reference (matmuls run in bf16 -> loose tolerance).
    out_ref, hidden_ref = gcn2_reference(x, adj, w1, b1, w2, b2)
    assert out.shape == out_ref.shape and hidden.shape == hidden_ref.shape
    assert jnp.allclose(out, out_ref, atol=2e-2, rtol=2e-2), (
        f"max |d_out| = {jnp.max(jnp.abs(out - out_ref))}")
    assert jnp.allclose(hidden, hidden_ref, atol=2e-2, rtol=2e-2), (
        f"max |d_hid| = {jnp.max(jnp.abs(hidden - hidden_ref))}")

    print("KERNEL_OK")
</pallas_src>

<mosaic_0001>
module attributes {stable_mosaic.version = 11 : i64} {
  func.func @_support_kernel(%arg0: i32, %arg1: i32, %arg2: memref<256x128xbf16, #tpu.memory_space<vmem>>, %arg3: memref<128x128xbf16, #tpu.memory_space<vmem>>, %arg4: memref<256x128xbf16, #tpu.memory_space<vmem>>, %arg5: memref<256x128xf32, #tpu.memory_space<vmem>>) attributes {dimension_semantics = [#tpu.dimension_semantics<parallel>, #tpu.dimension_semantics<arbitrary>], iteration_bounds = array<i64: 2, 1>, scalar_prefetch = 0 : i64, scratch_operands = 1 : i64, tpu.core_type = #tpu.core_type<tc>, window_params = [{transform_indices = @transform_0, window_bounds = array<i64: 256, 128>}, {transform_indices = @transform_1, window_bounds = array<i64: 128, 128>}, {transform_indices = @transform_2, window_bounds = array<i64: 256, 128>}]} {
    %c0 = arith.constant 0 : index
    %c0_0 = arith.constant 0 : index
    %0 = vector.load %arg2[%c0, %c0_0] : memref<256x128xbf16, #tpu.memory_space<vmem>>, vector<256x128xbf16>
    %c0_1 = arith.constant 0 : index
    %c0_2 = arith.constant 0 : index
    %1 = vector.load %arg3[%c0_1, %c0_2] : memref<128x128xbf16, #tpu.memory_space<vmem>>, vector<128x128xbf16>
    %cst = arith.constant dense<0.000000e+00> : vector<256x128xf32>
    %2 = tpu.matmul %0, %1, %cst {dimension_numbers = #tpu.dot_dimension_numbers<[1], [0], [0], [1], [0, 0, 1, 1], [], []>} : vector<256x128xbf16>, vector<128x128xbf16>, vector<256x128xf32> -> vector<256x128xf32>
    %c0_i32 = arith.constant 0 : i32
    %3 = arith.cmpi eq, %arg1, %c0_i32 : i32
    %4 = arith.extui %3 : i1 to i32
    %c0_i32_3 = arith.constant 0 : i32
    %5 = arith.cmpi ne, %4, %c0_i32_3 : i32
    scf.if %5 {
      %c0_8 = arith.constant 0 : index
      %c0_9 = arith.constant 0 : index
      %12 = vector.load %arg5[%c0_8, %c0_9] : memref<256x128xf32, #tpu.memory_space<vmem>>, vector<256x128xf32>
      tpu.vector_store %arg5[%c0_8, %c0_9], %2 {strides = array<i32>} : memref<256x128xf32, #tpu.memory_space<vmem>>, vector<256x128xf32>,
    } else {
    }
    %c0_i32_4 = arith.constant 0 : i32
    %6 = arith.cmpi sgt, %arg1, %c0_i32_4 : i32
    %7 = arith.extui %6 : i1 to i32
    %c0_i32_5 = arith.constant 0 : i32
    %8 = arith.cmpi ne, %7, %c0_i32_5 : i32
    scf.if %8 {
      %c0_8 = arith.constant 0 : index
      %c0_9 = arith.constant 0 : index
      %12 = vector.load %arg5[%c0_8, %c0_9] : memref<256x128xf32, #tpu.memory_space<vmem>>, vector<256x128xf32>
      %13 = arith.addf %12, %2 : vector<256x128xf32>
      %c0_10 = arith.constant 0 : index
      %c0_11 = arith.constant 0 : index
      %14 = vector.load %arg5[%c0_10, %c0_11] : memref<256x128xf32, #tpu.memory_space<vmem>>, vector<256x128xf32>
      tpu.vector_store %arg5[%c0_10, %c0_11], %13 {strides = array<i32>} : memref<256x128xf32, #tpu.memory_space<vmem>>, vector<256x128xf32>,
    } else {
    }
    %c0_i32_6 = arith.constant 0 : i32
    %9 = arith.cmpi eq, %arg1, %c0_i32_6 : i32
    %10 = arith.extui %9 : i1 to i32
    %c0_i32_7 = arith.constant 0 : i32
    %11 = arith.cmpi ne, %10, %c0_i32_7 : i32
    scf.if %11 {
      %c0_8 = arith.constant 0 : index
      %c0_9 = arith.constant 0 : index
      %12 = vector.load %arg5[%c0_8, %c0_9] : memref<256x128xf32, #tpu.memory_space<vmem>>, vector<256x128xf32>
      %13 = arith.truncf %12 : vector<256x128xf32> to vector<256x128xbf16>
      %c0_10 = arith.constant 0 : index
      %c0_11 = arith.constant 0 : index
      %14 = vector.load %arg4[%c0_10, %c0_11] : memref<256x128xbf16, #tpu.memory_space<vmem>>, vector<256x128xbf16>
      tpu.vector_store %arg4[%c0_10, %c0_11], %13 {strides = array<i32>} : memref<256x128xbf16, #tpu.memory_space<vmem>>, vector<256x128xbf16>,
    } else {
    }
    return
  }
  func.func @transform_0(%arg0: i32, %arg1: i32) -> (i32, i32) {
    %c0_i32 = arith.constant 0 : i32
    return %arg0, %arg1 : i32, i32
  }
  func.func @transform_1(%arg0: i32, %arg1: i32) -> (i32, i32) {
    %c0_i32 = arith.constant 0 : i32
    %c0_i32_0 = arith.constant 0 : i32
    return %arg1, %c0_i32 : i32, i32
  }
  func.func @transform_2(%arg0: i32, %arg1: i32) -> (i32, i32) {
    %c0_i32 = arith.constant 0 : i32
    %c0_i32_0 = arith.constant 0 : i32
    return %arg0, %c0_i32 : i32, i32
  }
}

module attributes {stable_mosaic.version = 11 : i64} {
  func.func @kernel(%arg0: i32, %arg1: i32, %arg2: memref<256x512xbf16, #tpu.memory_space<vmem>>, %arg3: memref<512x128xbf16, #tpu.memory_space<vmem>>, %arg4: memref<1x128xf32, #tpu.memory_space<vmem>>, %arg5: memref<128x128xbf16, #tpu.memory_space<vmem>>, %arg6: memref<256x128xf32, #tpu.memory_space<vmem>>, %arg7: memref<256x128xbf16, #tpu.memory_space<vmem>>, %arg8: memref<256x128xf32, #tpu.memory_space<vmem>>) attributes {dimension_semantics = [#tpu.dimension_semantics<parallel>, #tpu.dimension_semantics<arbitrary>], iteration_bounds = array<i64: 2, 1>, scalar_prefetch = 0 : i64, scratch_operands = 1 : i64, tpu.core_type = #tpu.core_type<tc>, window_params = [{transform_indices = @transform_0, window_bounds = array<i64: 256, 512>}, {pipeline_mode = #tpu.pipeline_mode<synchronous>, transform_indices = @transform_1, window_bounds = array<i64: 512, 128>}, {pipeline_mode = #tpu.pipeline_mode<synchronous>, transform_indices = @transform_2, window_bounds = array<i64: 1, 128>}, {pipeline_mode = #tpu.pipeline_mode<synchronous>, transform_indices = @transform_3, window_bounds = array<i64: 128, 128>}, {transform_indices = @transform_4, window_bounds = array<i64: 256, 128>}, {transform_indices = @transform_5, window_bounds = array<i64: 256, 128>}]} {
    %c512_i32 = arith.constant 512 : i32
    %0 = arith.muli %arg1, %c512_i32 : i32
    %1 = tpu.assume_multiple %0, 512 : i32
    %2 = arith.index_cast %1 : i32 to index
    %c0 = arith.constant 0 : index
    %3 = vector.load %arg3[%2, %c0] : memref<512x128xbf16, #tpu.memory_space<vmem>>, vector<512x128xbf16>
    %c0_0 = arith.constant 0 : index
    %c0_1 = arith.constant 0 : index
    %4 = vector.load %arg2[%c0_0, %c0_1] : memref<256x512xbf16, #tpu.memory_space<vmem>>, vector<256x512xbf16>
    %cst = arith.constant dense<0.000000e+00> : vector<256x128xf32>
    %5 = tpu.matmul %4, %3, %cst {dimension_numbers = #tpu.dot_dimension_numbers<[1], [0], [0], [1], [0, 0, 1, 1], [], []>} : vector<256x512xbf16>, vector<512x128xbf16>, vector<256x128xf32> -> vector<256x128xf32>
    %c0_i32 = arith.constant 0 : i32
    %6 = arith.cmpi eq, %arg1, %c0_i32 : i32
    %7 = arith.extui %6 : i1 to i32
    %c0_i32_2 = arith.constant 0 : i32
    %8 = arith.cmpi ne, %7, %c0_i32_2 : i32
    scf.if %8 {
      %c0_7 = arith.constant 0 : index
      %c0_8 = arith.constant 0 : index
      %15 = vector.load %arg8[%c0_7, %c0_8] : memref<256x128xf32, #tpu.memory_space<vmem>>, vector<256x128xf32>
      tpu.vector_store %arg8[%c0_7, %c0_8], %5 {strides = array<i32>} : memref<256x128xf32, #tpu.memory_space<vmem>>, vector<256x128xf32>,
    } else {
    }
    %c0_i32_3 = arith.constant 0 : i32
    %9 = arith.cmpi sgt, %arg1, %c0_i32_3 : i32
    %10 = arith.extui %9 : i1 to i32
    %c0_i32_4 = arith.constant 0 : i32
    %11 = arith.cmpi ne, %10, %c0_i32_4 : i32
    scf.if %11 {
      %c0_7 = arith.constant 0 : index
      %c0_8 = arith.constant 0 : index
      %15 = vector.load %arg8[%c0_7, %c0_8] : memref<256x128xf32, #tpu.memory_space<vmem>>, vector<256x128xf32>
      %16 = arith.addf %15, %5 : vector<256x128xf32>
      %c0_9 = arith.constant 0 : index
      %c0_10 = arith.constant 0 : index
      %17 = vector.load %arg8[%c0_9, %c0_10] : memref<256x128xf32, #tpu.memory_space<vmem>>, vector<256x128xf32>
      tpu.vector_store %arg8[%c0_9, %c0_10], %16 {strides = array<i32>} : memref<256x128xf32, #tpu.memory_space<vmem>>, vector<256x128xf32>,
    } else {
    }
    %c0_i32_5 = arith.constant 0 : i32
    %12 = arith.cmpi eq, %arg1, %c0_i32_5 : i32
    %13 = arith.extui %12 : i1 to i32
    %c0_i32_6 = arith.constant 0 : i32
    %14 = arith.cmpi ne, %13, %c0_i32_6 : i32
    scf.if %14 {
      %c0_7 = arith.constant 0 : index
      %c0_8 = arith.constant 0 : index
      %15 = vector.load %arg8[%c0_7, %c0_8] : memref<256x128xf32, #tpu.memory_space<vmem>>, vector<256x128xf32>
      %c0_9 = arith.constant 0 : index
      %c0_10 = arith.constant 0 : index
      %16 = vector.load %arg4[%c0_9, %c0_10] : memref<1x128xf32, #tpu.memory_space<vmem>>, vector<1x128xf32>
      %17 = vector.broadcast %16 : vector<1x128xf32> to vector<256x128xf32>
      %18 = arith.addf %15, %17 : vector<256x128xf32>
      %cst_11 = arith.constant 0.000000e+00 : f32
      %19 = vector.broadcast %cst_11 : f32 to vector<256x128xf32>
      %20 = arith.maximumf %18, %19 : vector<256x128xf32>
      %c0_12 = arith.constant 0 : index
      %c0_13 = arith.constant 0 : index
      %21 = vector.load %arg6[%c0_12, %c0_13] : memref<256x128xf32, #tpu.memory_space<vmem>>, vector<256x128xf32>
      tpu.vector_store %arg6[%c0_12, %c0_13], %20 {strides = array<i32>} : memref<256x128xf32, #tpu.memory_space<vmem>>, vector<256x128xf32>,
      %22 = arith.truncf %20 : vector<256x128xf32> to vector<256x128xbf16>
      %c0_14 = arith.constant 0 : index
      %c0_15 = arith.constant 0 : index
      %23 = vector.load %arg5[%c0_14, %c0_15] : memref<128x128xbf16, #tpu.memory_space<vmem>>, vector<128x128xbf16>
      %cst_16 = arith.constant dense<0.000000e+00> : vector<256x128xf32>
      %24 = tpu.matmul %22, %23, %cst_16 {dimension_numbers = #tpu.dot_dimension_numbers<[1], [0], [0], [1], [0, 0, 1, 1], [], []>} : vector<256x128xbf16>, vector<128x128xbf16>, vector<256x128xf32> -> vector<256x128xf32>
      %25 = arith.truncf %24 : vector<256x128xf32> to vector<256x128xbf16>
      %c0_17 = arith.constant 0 : index
      %c0_18 = arith.constant 0 : index
      %26 = vector.load %arg7[%c0_17, %c0_18] : memref<256x128xbf16, #tpu.memory_space<vmem>>, vector<256x128xbf16>
      tpu.vector_store %arg7[%c0_17, %c0_18], %25 {strides = array<i32>} : memref<256x128xbf16, #tpu.memory_space<vmem>>, vector<256x128xbf16>,
    } else {
    }
    return
  }
  func.func @transform_0(%arg0: i32, %arg1: i32) -> (i32, i32) {
    %c0_i32 = arith.constant 0 : i32
    return %arg0, %arg1 : i32, i32
  }
  func.func @transform_1(%arg0: i32, %arg1: i32) -> (i32, i32) {
    %c0_i32 = arith.constant 0 : i32
    %c0_i32_0 = arith.constant 0 : i32
    %c0_i32_1 = arith.constant 0 : i32
    return %c0_i32, %c0_i32_0 : i32, i32
  }
  func.func @transform_2(%arg0: i32, %arg1: i32) -> (i32, i32) {
    %c0_i32 = arith.constant 0 : i32
    %c0_i32_0 = arith.constant 0 : i32
    %c0_i32_1 = arith.constant 0 : i32
    return %c0_i32, %c0_i32_0 : i32, i32
  }
  func.func @transform_3(%arg0: i32, %arg1: i32) -> (i32, i32) {
    %c0_i32 = arith.constant 0 : i32
    %c0_i32_0 = arith.constant 0 : i32
    %c0_i32_1 = arith.constant 0 : i32
    return %c0_i32, %c0_i32_0 : i32, i32
  }
  func.func @transform_4(%arg0: i32, %arg1: i32) -> (i32, i32) {
    %c0_i32 = arith.constant 0 : i32
    %c0_i32_0 = arith.constant 0 : i32
    return %arg0, %c0_i32 : i32, i32
  }
  func.func @transform_5(%arg0: i32, %arg1: i32) -> (i32, i32) {
    %c0_i32 = arith.constant 0 : i32
    %c0_i32_0 = arith.constant 0 : i32
    return %arg0, %c0_i32 : i32, i32
  }
}

module attributes {stable_mosaic.version = 11 : i64} {
  func.func @kernel(%arg0: i32, %arg1: i32, %arg2: memref<256x512xbf16, #tpu.memory_space<vmem>>, %arg3: memref<512x128xbf16, #tpu.memory_space<vmem>>, %arg4: memref<1x128xf32, #tpu.memory_space<vmem>>, %arg5: memref<256x128xf32, #tpu.memory_space<vmem>>, %arg6: memref<256x128xf32, #tpu.memory_space<vmem>>) attributes {dimension_semantics = [#tpu.dimension_semantics<parallel>, #tpu.dimension_semantics<arbitrary>], iteration_bounds = array<i64: 2, 1>, scalar_prefetch = 0 : i64, scratch_operands = 1 : i64, tpu.core_type = #tpu.core_type<tc>, window_params = [{transform_indices = @transform_0, window_bounds = array<i64: 256, 512>}, {pipeline_mode = #tpu.pipeline_mode<synchronous>, transform_indices = @transform_1, window_bounds = array<i64: 512, 128>}, {pipeline_mode = #tpu.pipeline_mode<synchronous>, transform_indices = @transform_2, window_bounds = array<i64: 1, 128>}, {transform_indices = @transform_3, window_bounds = array<i64: 256, 128>}]} {
    %c512_i32 = arith.constant 512 : i32
    %0 = arith.muli %arg1, %c512_i32 : i32
    %1 = tpu.assume_multiple %0, 512 : i32
    %2 = arith.index_cast %1 : i32 to index
    %c0 = arith.constant 0 : index
    %3 = vector.load %arg3[%2, %c0] : memref<512x128xbf16, #tpu.memory_space<vmem>>, vector<512x128xbf16>
    %c0_0 = arith.constant 0 : index
    %c0_1 = arith.constant 0 : index
    %4 = vector.load %arg2[%c0_0, %c0_1] : memref<256x512xbf16, #tpu.memory_space<vmem>>, vector<256x512xbf16>
    %cst = arith.constant dense<0.000000e+00> : vector<256x128xf32>
    %5 = tpu.matmul %4, %3, %cst {dimension_numbers = #tpu.dot_dimension_numbers<[1], [0], [0], [1], [0, 0, 1, 1], [], []>} : vector<256x512xbf16>, vector<512x128xbf16>, vector<256x128xf32> -> vector<256x128xf32>
    %c0_i32 = arith.constant 0 : i32
    %6 = arith.cmpi eq, %arg1, %c0_i32 : i32
    %7 = arith.extui %6 : i1 to i32
    %c0_i32_2 = arith.constant 0 : i32
    %8 = arith.cmpi ne, %7, %c0_i32_2 : i32
    scf.if %8 {
      %c0_7 = arith.constant 0 : index
      %c0_8 = arith.constant 0 : index
      %15 = vector.load %arg6[%c0_7, %c0_8] : memref<256x128xf32, #tpu.memory_space<vmem>>, vector<256x128xf32>
      tpu.vector_store %arg6[%c0_7, %c0_8], %5 {strides = array<i32>} : memref<256x128xf32, #tpu.memory_space<vmem>>, vector<256x128xf32>,
    } else {
    }
    %c0_i32_3 = arith.constant 0 : i32
    %9 = arith.cmpi sgt, %arg1, %c0_i32_3 : i32
    %10 = arith.extui %9 : i1 to i32
    %c0_i32_4 = arith.constant 0 : i32
    %11 = arith.cmpi ne, %10, %c0_i32_4 : i32
    scf.if %11 {
      %c0_7 = arith.constant 0 : index
      %c0_8 = arith.constant 0 : index
      %15 = vector.load %arg6[%c0_7, %c0_8] : memref<256x128xf32, #tpu.memory_space<vmem>>, vector<256x128xf32>
      %16 = arith.addf %15, %5 : vector<256x128xf32>
      %c0_9 = arith.constant 0 : index
      %c0_10 = arith.constant 0 : index
      %17 = vector.load %arg6[%c0_9, %c0_10] : memref<256x128xf32, #tpu.memory_space<vmem>>, vector<256x128xf32>
      tpu.vector_store %arg6[%c0_9, %c0_10], %16 {strides = array<i32>} : memref<256x128xf32, #tpu.memory_space<vmem>>, vector<256x128xf32>,
    } else {
    }
    %c0_i32_5 = arith.constant 0 : i32
    %12 = arith.cmpi eq, %arg1, %c0_i32_5 : i32
    %13 = arith.extui %12 : i1 to i32
    %c0_i32_6 = arith.constant 0 : i32
    %14 = arith.cmpi ne, %13, %c0_i32_6 : i32
    scf.if %14 {
      %c0_7 = arith.constant 0 : index
      %c0_8 = arith.constant 0 : index
      %15 = vector.load %arg6[%c0_7, %c0_8] : memref<256x128xf32, #tpu.memory_space<vmem>>, vector<256x128xf32>
      %c0_9 = arith.constant 0 : index
      %c0_10 = arith.constant 0 : index
      %16 = vector.load %arg4[%c0_9, %c0_10] : memref<1x128xf32, #tpu.memory_space<vmem>>, vector<1x128xf32>
      %17 = vector.broadcast %16 : vector<1x128xf32> to vector<256x128xf32>
      %18 = arith.addf %15, %17 : vector<256x128xf32>
      %19 = arith.negf %18 : vector<256x128xf32>
      %20 = math.exp %19 : vector<256x128xf32>
      %cst_11 = arith.constant 1.000000e+00 : f32
      %21 = vector.broadcast %cst_11 : f32 to vector<256x128xf32>
      %22 = arith.addf %21, %20 : vector<256x128xf32>
      %23 = arith.divf %21, %22 : vector<256x128xf32>
      %c0_12 = arith.constant 0 : index
      %c0_13 = arith.constant 0 : index
      %24 = vector.load %arg5[%c0_12, %c0_13] : memref<256x128xf32, #tpu.memory_space<vmem>>, vector<256x128xf32>
      tpu.vector_store %arg5[%c0_12, %c0_13], %23 {strides = array<i32>} : memref<256x128xf32, #tpu.memory_space<vmem>>, vector<256x128xf32>,
    } else {
    }
    return
  }
  func.func @transform_0(%arg0: i32, %arg1: i32) -> (i32, i32) {
    %c0_i32 = arith.constant 0 : i32
    return %arg0, %arg1 : i32, i32
  }
  func.func @transform_1(%arg0: i32, %arg1: i32) -> (i32, i32) {
    %c0_i32 = arith.constant 0 : i32
    %c0_i32_0 = arith.constant 0 : i32
    %c0_i32_1 = arith.constant 0 : i32
    return %c0_i32, %c0_i32_0 : i32, i32
  }
  func.func @transform_2(%arg0: i32, %arg1: i32) -> (i32, i32) {
    %c0_i32 = arith.constant 0 : i32
    %c0_i32_0 = arith.constant 0 : i32
    %c0_i32_1 = arith.constant 0 : i32
    return %c0_i32, %c0_i32_0 : i32, i32
  }
  func.func @transform_3(%arg0: i32, %arg1: i32) -> (i32, i32) {
    %c0_i32 = arith.constant 0 : i32
    %c0_i32_0 = arith.constant 0 : i32
    return %arg0, %c0_i32 : i32, i32
  }
}

</mosaic_0001>

<bundles_post_ra>
// kernel: gcn2_forward.3
= control target key start
LH: loop header
LB: loop body
LE: loop exit
PB: predicated region body
PF: predicated region fallthrough
CT: control target
= control target key end

     0   :  { %s1330_s9 = smov 0   ;;  %s1332_s10 = smov 0   ;;  %s1430_s0 = inlined_call_operand.vmem [shape: bf16[512,128], index: 0, kind: input, shape index: {}]   ;;  %s1431_s1 = inlined_call_operand.vmem [shape: bf16[128,128], index: 1, kind: input, shape index: {}]   ;;  %s1432_s2 = inlined_call_operand.vmem [shape: bf16[512,128], index: 2, kind: output, shape index: {}]  }
   0x1   :  { %s1334_s11 = smov 0  }
   0x2 LB: > { %s24_s12 = sadd.s32 1, %s1309_s10  ;;  %p965_p0 = scmp.ge.s32.totalorder %s1313_s11, 1  ;;  %s1313_s11 = sphi %s1334_s11, %s12_s11   ;;  %s1309_s10 = sphi %s1332_s10, %s1434_s10   ;;  %s1305_s9 = sphi %s1330_s9, %s1433_s9  }
   0x3   : > { %p26_p1 = scmp.ge.s32.totalorder %s24_s12, 2  ;;  %p141_p2 = scmp.lt.s32.totalorder %s1313_s11, 3 }
   0x5   : > { %s1436_s12 = smov (%p26_p1, %s24_s12), 0  ;;  %p142_p3 = pnand %p965_p0, %p141_p2 }
   0x6   : > { %s966_s15 = sshll.u32 (!%p142_p3), %s1305_s9, 5 }
   0x7   : > { %145 = sbr.rel (%p142_p3) target bundleno = 271 (0x10f), region = 28  ;;  %p172_p4 = scmp.lt.s32.totalorder (!%p142_p3), %s966_s15, 63 }
   0xc   : > { %v1267_v0 = vld [vmem:[%s1431_s1 + $0x38] sm:$0xff]   ;;  %v1268_v1 = vld [vmem:[%s1431_s1 + $0x30] sm:$0xff]   ;;  %s1438_s15 = smov (!%p172_p4, %s966_s15), 63  ;;  %v1269_v2 = vld [vmem:[%s1431_s1 + $0x28] sm:$0xff]  }
   0xd   : > { %1179 = vmatprep.subr.bf16.mxu0 %v1267_v0  ;;  %1227 = vmatprep.subr.bf16.mxu1 %v1267_v0  ;;  %s967_s20 = sshll.u32 %s1438_s15, 2  ;;  %v1270_v3 = vld [vmem:[%s1431_s1 + $0x20] sm:$0xff]   ;;  %v1271_v6 = vld [vmem:[%s1431_s1 + $0x18] sm:$0xff]   ;;  %v1272_v7 = vld [vmem:[%s1431_s1 + $0x10] sm:$0xff]  }
   0xe   : > { %1180 = vmatpush3.bf16.msra.mxu0 %v1267_v0  ;;  %1235 = vmatpush3.bf16.msra.mxu1 %v1267_v0  ;;  %s1365_s23 = scalar_lea.vmem %s1430_s0, %s967_s20  ;;  %v1273_v8 = vld [vmem:[%s1431_s1 + $0x8] sm:$0xff]   ;;  %v1274_v9 = vld [vmem:[%s1431_s1] sm:$0xff]   ;;  %s1403_s8 = scalar_lea.vmem %s1432_s2, %s967_s20 }
   0xf   : > { %1181 = vmatprep.subr.bf16.mxu0 %v1268_v1  ;;  %1228 = vmatprep.subr.bf16.mxu1 %v1268_v1  ;;  %v1275_v4 = vld [vmem:[%s1365_s23] sm:$0xff]   ;;  %v1277_v10 = vld [vmem:[%s1365_s23 + $0x8] sm:$0xff]   ;;  %v1279_v12 = vld [vmem:[%s1365_s23 + $0x10] sm:$0xff]  }
  0x10   : > { %v1276_v5 = vld [vmem:[%s1365_s23 + $0x40] sm:$0xff]   ;;  %1195 = vmatprep.mubr.bf16.mxu0 %v1275_v4  ;;  %v1278_v11 = vld [vmem:[%s1365_s23 + $0x48] sm:$0xff]   ;;  %v1280_v13 = vld [vmem:[%s1365_s23 + $0x50] sm:$0xff]  }
  0x11   : > { %1211 = vmatprep.mubr.bf16.mxu1 %v1276_v5  ;;  %v1281_v14 = vld [vmem:[%s1365_s23 + $0x18] sm:$0xff]   ;;  %v1283_v16 = vld [vmem:[%s1365_s23 + $0x20] sm:$0xff]   ;;  %v1285_v18 = vld [vmem:[%s1365_s23 + $0x28] sm:$0xff]  }
  0x12   : > { %1182 = vmatpush3.bf16.msra.mxu0 %v1268_v1  ;;  %1236 = vmatpush3.bf16.msra.mxu1 %v1268_v1  ;;  %v1282_v15 = vld [vmem:[%s1365_s23 + $0x58] sm:$0xff]   ;;  %v1284_v17 = vld [vmem:[%s1365_s23 + $0x60] sm:$0xff]   ;;  %v1286_v19 = vld [vmem:[%s1365_s23 + $0x68] sm:$0xff]  }
  0x13   : > { %1183 = vmatprep.subr.bf16.mxu0 %v1269_v2  ;;  %1229 = vmatprep.subr.bf16.mxu1 %v1269_v2  ;;  %v1287_v20 = vld [vmem:[%s1365_s23 + $0x30] sm:$0xff]   ;;  %v1289_v22 = vld [vmem:[%s1365_s23 + $0x38] sm:$0xff]  }
  0x14   : > { %v1288_v21 = vld [vmem:[%s1365_s23 + $0x70] sm:$0xff]   ;;  %v1290_v23 = vld [vmem:[%s1365_s23 + $0x78] sm:$0xff]  }
  0x16   : > { %1184 = vmatpush3.bf16.msra.mxu0 %v1269_v2  ;;  %1237 = vmatpush3.bf16.msra.mxu1 %v1269_v2 }
  0x17   : > { %1185 = vmatprep.subr.bf16.mxu0 %v1270_v3  ;;  %1230 = vmatprep.subr.bf16.mxu1 %v1270_v3 }
  0x1a   : > { %1186 = vmatpush3.bf16.msra.mxu0 %v1270_v3  ;;  %1238 = vmatpush3.bf16.msra.mxu1 %v1270_v3 }
  0x1b   : > { %1187 = vmatprep.subr.bf16.mxu0 %v1271_v6  ;;  %1231 = vmatprep.subr.bf16.mxu1 %v1271_v6 }
  0x1e   : > { %1188 = vmatpush3.bf16.msra.mxu0 %v1271_v6  ;;  %1239 = vmatpush3.bf16.msra.mxu1 %v1271_v6 }
  0x1f   : > { %1189 = vmatprep.subr.bf16.mxu0 %v1272_v7  ;;  %1232 = vmatprep.subr.bf16.mxu1 %v1272_v7 }
  0x22   : > { %1190 = vmatpush3.bf16.msra.mxu0 %v1272_v7  ;;  %1240 = vmatpush3.bf16.msra.mxu1 %v1272_v7 }
  0x23   : > { %1191 = vmatprep.subr.bf16.mxu0 %v1273_v8  ;;  %1233 = vmatprep.subr.bf16.mxu1 %v1273_v8 }
  0x26   : > { %1192 = vmatpush3.bf16.msra.mxu0 %v1273_v8  ;;  %1241 = vmatpush3.bf16.msra.mxu1 %v1273_v8 }
  0x27   : > { %1193 = vmatprep.subr.bf16.mxu0 %v1274_v9  ;;  %1234 = vmatprep.subr.bf16.mxu1 %v1274_v9 }
  0x2a   : > { %1194 = vmatpush3.bf16.msra.mxu0 %v1274_v9  ;;  %1242 = vmatpush3.bf16.msra.mxu1 %v1274_v9 }
  0x2d   : > { %1196 = vmatmul.mubr.bf16.vlgmr.msra.gmra.mxu0 %v1277_v10  ;;  %1212 = vmatmul.mubr.bf16.vlgmr.msra.gmra.mxu1 %v1278_v11 }
  0x2e   : > { %1199 = vmatprep.mubr.bf16.mxu0 %v1279_v12  ;;  %1215 = vmatprep.mubr.bf16.mxu1 %v1280_v13 }
  0x35   : > { %1200 = vmatmul.mubr.bf16.gmra.mxu0 %v1281_v14  ;;  %1216 = vmatmul.mubr.bf16.gmra.mxu1 %v1282_v15 }
  0x36   : > { %1203 = vmatprep.mubr.bf16.mxu0 %v1283_v16  ;;  %1219 = vmatprep.mubr.bf16.mxu1 %v1284_v17 }
  0x3d   : > { %1204 = vmatmul.mubr.bf16.gmra.mxu0 %v1285_v18  ;;  %1220 = vmatmul.mubr.bf16.gmra.mxu1 %v1286_v19 }
  0x3e   : > { %1207 = vmatprep.mubr.bf16.mxu0 %v1287_v20  ;;  %1223 = vmatprep.mubr.bf16.mxu1 %v1288_v21 }
  0x45   : > { %1208 = vmatmul.mubr.bf16.gmra.mxu0 %v1289_v22  ;;  %1224 = vmatmul.mubr.bf16.gmra.mxu1 %v1290_v23 }
  0xed   : > { %v1197_v24 = vpop.f32.mrf.mxu0  ;;  %v1213_v25 = vpop.f32.mrf.mxu1 }
  0xef   : > { %v419_v26 = vpop.f32.mrf.mxu0  ;;  %v483_v27 = vpop.f32.mrf.mxu1 }
  0xf1   : > { %v1198_v28 = vpop.f32.mrf.mxu0  ;;  %v1214_v29 = vpop.f32.mrf.mxu1 }
  0xf2   : > { %v1068_v30 = vpack.c.bf16 %v1198_v28, %v1197_v24  ;;  %v1108_v31 = vpack.c.bf16 %v1214_v29, %v1213_v25 }
  0xf3   : > { %v422_v32 = vpop.f32.mrf.mxu0  ;;  %v486_v33 = vpop.f32.mrf.mxu1 }
  0xf4   : > { %1140 = vst [vmem:[%s1403_s8 + $0x8] sm:$0xff] %v1068_v30   ;;  %1148 = vst [vmem:[%s1403_s8 + $0x48] sm:$0xff] %v1108_v31   ;;  %v1063_v34 = vpack.c.bf16 %v422_v32, %v419_v26  ;;  %v1103_v35 = vpack.c.bf16 %v486_v33, %v483_v27 }
  0xf5   : > { %v1201_v36 = vpop.f32.mrf.mxu0  ;;  %v1217_v37 = vpop.f32.mrf.mxu1 }
  0xf6   : > { %1064 = vst [vmem:[%s1403_s8] sm:$0xff] %v1063_v34   ;;  %1147 = vst [vmem:[%s1403_s8 + $0x40] sm:$0xff] %v1103_v35  }
  0xf7   : > { %v435_v38 = vpop.f32.mrf.mxu0  ;;  %v499_v39 = vpop.f32.mrf.mxu1 }
  0xf9   : > { %v1202_v40 = vpop.f32.mrf.mxu0  ;;  %v1218_v41 = vpop.f32.mrf.mxu1 }
  0xfa   : > { %v1078_v42 = vpack.c.bf16 %v1202_v40, %v1201_v36  ;;  %v1118_v43 = vpack.c.bf16 %v1218_v41, %v1217_v37 }
  0xfb   : > { %v438_v44 = vpop.f32.mrf.mxu0  ;;  %v502_v45 = vpop.f32.mrf.mxu1 }
  0xfc   : > { %1142 = vst [vmem:[%s1403_s8 + $0x18] sm:$0xff] %v1078_v42   ;;  %1150 = vst [vmem:[%s1403_s8 + $0x58] sm:$0xff] %v1118_v43   ;;  %v1073_v46 = vpack.c.bf16 %v438_v44, %v435_v38  ;;  %v1113_v47 = vpack.c.bf16 %v502_v45, %v499_v39 }
  0xfd   : > { %v1205_v48 = vpop.f32.mrf.mxu0  ;;  %v1221_v49 = vpop.f32.mrf.mxu1 }
  0xfe   : > { %1141 = vst [vmem:[%s1403_s8 + $0x10] sm:$0xff] %v1073_v46   ;;  %1149 = vst [vmem:[%s1403_s8 + $0x50] sm:$0xff] %v1113_v47  }
  0xff   : > { %v451_v50 = vpop.f32.mrf.mxu0  ;;  %v515_v51 = vpop.f32.mrf.mxu1 }
 0x101   : > { %v1206_v52 = vpop.f32.mrf.mxu0  ;;  %v1222_v53 = vpop.f32.mrf.mxu1 }
 0x102   : > { %v1088_v54 = vpack.c.bf16 %v1206_v52, %v1205_v48  ;;  %v1128_v55 = vpack.c.bf16 %v1222_v53, %v1221_v49 }
 0x103   : > { %v454_v56 = vpop.f32.mrf.mxu0  ;;  %v518_v57 = vpop.f32.mrf.mxu1 }
 0x104   : > { %1144 = vst [vmem:[%s1403_s8 + $0x28] sm:$0xff] %v1088_v54   ;;  %1152 = vst [vmem:[%s1403_s8 + $0x68] sm:$0xff] %v1128_v55   ;;  %v1083_v58 = vpack.c.bf16 %v454_v56, %v451_v50  ;;  %v1123_v59 = vpack.c.bf16 %v518_v57, %v515_v51 }
 0x105   : > { %v1209_v60 = vpop.f32.mrf.mxu0  ;;  %v1225_v61 = vpop.f32.mrf.mxu1 }
 0x106   : > { %1143 = vst [vmem:[%s1403_s8 + $0x20] sm:$0xff] %v1083_v58   ;;  %1151 = vst [vmem:[%s1403_s8 + $0x60] sm:$0xff] %v1123_v59  }
 0x107   : > { %v467_v62 = vpop.f32.mrf.mxu0  ;;  %v531_v63 = vpop.f32.mrf.mxu1 }
 0x109   : > { %v1210_v0 = vpop.f32.mrf.mxu0  ;;  %v1226_v1 = vpop.f32.mrf.mxu1 }
 0x10a   : > { %v1098_v2 = vpack.c.bf16 %v1210_v0, %v1209_v60  ;;  %v1138_v3 = vpack.c.bf16 %v1226_v1, %v1225_v61 }
 0x10b   : > { %v470_v4 = vpop.f32.mrf.mxu0  ;;  %v534_v5 = vpop.f32.mrf.mxu1 }
 0x10c   : > { %1146 = vst [vmem:[%s1403_s8 + $0x38] sm:$0xff] %v1098_v2   ;;  %1154 = vst [vmem:[%s1403_s8 + $0x78] sm:$0xff] %v1138_v3   ;;  %v1093_v6 = vpack.c.bf16 %v470_v4, %v467_v62  ;;  %v1133_v7 = vpack.c.bf16 %v534_v5, %v531_v63 }
 0x10e   : > { %1145 = vst [vmem:[%s1403_s8 + $0x30] sm:$0xff] %v1093_v6   ;;  %1153 = vst [vmem:[%s1403_s8 + $0x70] sm:$0xff] %v1133_v7  }
 0x10f PF: > { %s12_s11 = sadd.s32 1, %s1313_s11   ;;  %s1433_s9 = smov %s1309_s10 }
 0x110   : > { %p9_p5 = scmp.ge.s32.totalorder %s12_s11, 4   ;;  %s1434_s10 = smov %s1436_s12 }
 0x112   :  { %11 = sbr.rel (!%p9_p5) target bundleno = 2 (0x2), region = 73 }

// kernel: gcn2_forward.5
= control target key start
LH: loop header
LB: loop body
LE: loop exit
PB: predicated region body
PF: predicated region fallthrough
CT: control target
= control target key end

     0   :  { %s2370_s12 = smov 0   ;;  %s2372_s13 = smov 0   ;;  %s2643_s0 = inlined_call_operand.vmem [shape: bf16[512,512], index: 0, kind: input, shape index: {}]   ;;  %s2644_s1 = inlined_call_operand.vmem [shape: bf16[512,128], index: 1, kind: input, shape index: {}]   ;;  %s2645_s2 = inlined_call_operand.vmem [shape: f32[1,128], index: 2, kind: input, shape index: {}]   ;;  %s2646_s3 = inlined_call_operand.vmem [shape: f32[512,128], index: 3, kind: output, shape index: {}]  }
   0x1   :  { %s2374_s14 = smov 0  }
   0x2 LB: > { %s25_s15 = sadd.s32 1, %s2344_s13  ;;  %p1684_p0 = scmp.ge.s32.totalorder %s2348_s14, 1  ;;  %s2348_s14 = sphi %s2374_s14, %s13_s14   ;;  %s2344_s13 = sphi %s2372_s13, %s2648_s13   ;;  %s2340_s12 = sphi %s2370_s12, %s2647_s12  }
   0x3   : > { %p27_p1 = scmp.ge.s32.totalorder %s25_s15, 2  ;;  %p158_p2 = scmp.lt.s32.totalorder %s2348_s14, 3 }
   0x5   : > { %s2650_s15 = smov (%p27_p1, %s25_s15), 0  ;;  %p159_p3 = pnand %p1684_p0, %p158_p2 }
   0x6   : > { %s1685_s25 = sshll.u32 (!%p159_p3), %s2340_s12, 5 }
   0x7   : > { %162 = sbr.rel (%p159_p3) target bundleno = 406 (0x196), region = 32  ;;  %p189_p4 = scmp.lt.s32.totalorder (!%p159_p3), %s1685_s25, 63 }
   0xc   : > { %v2070_v0 = vld [vmem:[%s2644_s1 + $0x78] sm:$0xff]   ;;  %v2074_v4 = vld [vmem:[%s2644_s1 + $0x70] sm:$0xff]   ;;  %v2078_v8 = vld [vmem:[%s2644_s1 + $0x68] sm:$0xff]   ;;  %s2652_s25 = smov (!%p189_p4, %s1685_s25), 63 }
   0xd   : > { %v2071_v1 = vld [vmem:[%s2644_s1 + $0xf8] sm:$0xff]   ;;  %1822 = vmatprep.subr.bf16.mxu0 %v2070_v0  ;;  %v2075_v5 = vld [vmem:[%s2644_s1 + $0xf0] sm:$0xff]   ;;  %v2079_v9 = vld [vmem:[%s2644_s1 + $0xe8] sm:$0xff]   ;;  %s1821_s24 = sshll.u32 %s2652_s25, 4  ;;  %s1689_s17 = sshll.u32 %s2652_s25, 3 }
   0xe   : > { %v2072_v2 = vld [vmem:[%s2644_s1 + $0x38] sm:$0xff]   ;;  %1934 = vmatprep.subr.bf16.mxu1 %v2071_v1  ;;  %v2076_v6 = vld [vmem:[%s2644_s1 + $0x30] sm:$0xff]   ;;  %v2080_v10 = vld [vmem:[%s2644_s1 + $0x28] sm:$0xff]   ;;  %s2487_s12 = scalar_lea.vmem %s2643_s0, %s1821_s24  ;;  %s2576_s20 = scalar_lea.vmem %s2646_s3, %s1689_s17 }
   0xf   : > { %v2073_v3 = vld [vmem:[%s2644_s1 + $0xb8] sm:$0xff]   ;;  %1823 = vmatpush3.bf16.msra.mxu0 %v2072_v2  ;;  %v2077_v7 = vld [vmem:[%s2644_s1 + $0xb0] sm:$0xff]   ;;  %v2081_v11 = vld [vmem:[%s2644_s1 + $0xa8] sm:$0xff]  }
  0x10   : > { %1935 = vmatpush3.bf16.msra.mxu1 %v2073_v3  ;;  %1824 = vmatprep.subr.bf16.mxu0 %v2074_v4  ;;  %v2082_v12 = vld [vmem:[%s2644_s1 + $0x60] sm:$0xff]   ;;  %v2086_v16 = vld [vmem:[%s2644_s1 + $0x58] sm:$0xff]   ;;  %v2090_v20 = vld [vmem:[%s2644_s1 + $0x50] sm:$0xff]  }
  0x11   : > { %1936 = vmatprep.subr.bf16.mxu1 %v2075_v5  ;;  %v2083_v13 = vld [vmem:[%s2644_s1 + $0xe0] sm:$0xff]   ;;  %v2087_v17 = vld [vmem:[%s2644_s1 + $0xd8] sm:$0xff]   ;;  %v2091_v21 = vld [vmem:[%s2644_s1 + $0xd0] sm:$0xff]  }
  0x12   : > { %v2084_v14 = vld [vmem:[%s2644_s1 + $0x20] sm:$0xff]   ;;  %v2088_v18 = vld [vmem:[%s2644_s1 + $0x18] sm:$0xff]   ;;  %v2092_v22 = vld [vmem:[%s2644_s1 + $0x10] sm:$0xff]  }
  0x13   : > { %1825 = vmatpush3.bf16.msra.mxu0 %v2076_v6  ;;  %v2085_v15 = vld [vmem:[%s2644_s1 + $0xa0] sm:$0xff]   ;;  %v2089_v19 = vld [vmem:[%s2644_s1 + $0x98] sm:$0xff]   ;;  %v2093_v23 = vld [vmem:[%s2644_s1 + $0x90] sm:$0xff]  }
  0x14   : > { %1937 = vmatpush3.bf16.msra.mxu1 %v2077_v7  ;;  %1826 = vmatprep.subr.bf16.mxu0 %v2078_v8  ;;  %v2094_v24 = vld [vmem:[%s2644_s1 + $0x48] sm:$0xff]   ;;  %v2098_v28 = vld [vmem:[%s2644_s1 + $0x40] sm:$0xff]  }
  0x15   : > { %1938 = vmatprep.subr.bf16.mxu1 %v2079_v9  ;;  %v2095_v25 = vld [vmem:[%s2644_s1 + $0xc8] sm:$0xff]   ;;  %v2099_v29 = vld [vmem:[%s2644_s1 + $0xc0] sm:$0xff]  }
  0x16   : > { %v2096_v26 = vld [vmem:[%s2644_s1 + $0x8] sm:$0xff]   ;;  %v2100_v30 = vld [vmem:[%s2644_s1] sm:$0xff]  }
  0x17   : > { %1827 = vmatpush3.bf16.msra.mxu0 %v2080_v10  ;;  %v2097_v27 = vld [vmem:[%s2644_s1 + $0x88] sm:$0xff]   ;;  %v2101_v31 = vld [vmem:[%s2644_s1 + $0x80] sm:$0xff]  }
  0x18   : > { %1939 = vmatpush3.bf16.msra.mxu1 %v2081_v11  ;;  %1828 = vmatprep.subr.bf16.mxu0 %v2082_v12  ;;  %v2102_v32 = vld [vmem:[%s2487_s12] ss:$16 sps:$4 sm:$0xff]   ;;  %v2104_v33 = vld [vmem:[%s2487_s12 + $0x4] ss:$16 sps:$4 sm:$0xff]   ;;  %v2105_v34 = vld [vmem:[%s2487_s12 + $0x8] ss:$16 sps:$4 sm:$0xff]  }
  0x19   : > { %1940 = vmatprep.subr.bf16.mxu1 %v2083_v13  ;;  %v2107_v35 = vld [vmem:[%s2487_s12 + $0xc] ss:$16 sps:$4 sm:$0xff]   ;;  %883 = vmatprep.mubr.bf16.mxu0 %v2104_v33  ;;  %v2108_v36 = vld [vmem:[%s2487_s12 + $0x24] ss:$16 sps:$4 sm:$0xff]   ;;  %v2112_v38 = vld [vmem:[%s2487_s12 + $0x20] ss:$16 sps:$4 sm:$0xff]  }
  0x1a   : > { %1044 = vmatprep.mubr.bf16.mxu1 %v2107_v35  ;;  %v2110_v37 = vld [vmem:[%s2487_s12 + $0x2c] ss:$16 sps:$4 sm:$0xff]   ;;  %v2113_v39 = vld [vmem:[%s2487_s12 + $0x28] ss:$16 sps:$4 sm:$0xff]   ;;  %v2114_v40 = vld [vmem:[%s2487_s12 + $0x44] ss:$16 sps:$4 sm:$0xff]  }
  0x1b   : > { %1829 = vmatpush3.bf16.msra.mxu0 %v2084_v14  ;;  %v2116_v41 = vld [vmem:[%s2487_s12 + $0x4c] ss:$16 sps:$4 sm:$0xff]   ;;  %v2118_v42 = vld [vmem:[%s2487_s12 + $0x40] ss:$16 sps:$4 sm:$0xff]   ;;  %v2119_v43 = vld [vmem:[%s2487_s12 + $0x48] ss:$16 sps:$4 sm:$0xff]  }
  0x1c   : > { %1941 = vmatpush3.bf16.msra.mxu1 %v2085_v15  ;;  %1830 = vmatprep.subr.bf16.mxu0 %v2086_v16  ;;  %v2120_v44 = vld [vmem:[%s2487_s12 + $0x64] ss:$16 sps:$4 sm:$0xff]   ;;  %v2122_v45 = vld [vmem:[%s2487_s12 + $0x6c] ss:$16 sps:$4 sm:$0xff]   ;;  %v2124_v46 = vld [vmem:[%s2487_s12 + $0x60] ss:$16 sps:$4 sm:$0xff]  }
  0x1d   : > { %1942 = vmatprep.subr.bf16.mxu1 %v2087_v17  ;;  %v2125_v47 = vld [vmem:[%s2487_s12 + $0x68] ss:$16 sps:$4 sm:$0xff]   ;;  %v2126_v48 = vld [vmem:[%s2487_s12 + $0x84] ss:$16 sps:$4 sm:$0xff]   ;;  %v2128_v49 = vld [vmem:[%s2487_s12 + $0x8c] ss:$16 sps:$4 sm:$0xff]  }
  0x1e   : > { %v2130_v50 = vld [vmem:[%s2487_s12 + $0x80] ss:$16 sps:$4 sm:$0xff]   ;;  %v2131_v51 = vld [vmem:[%s2487_s12 + $0x88] ss:$16 sps:$4 sm:$0xff]   ;;  %v2132_v52 = vld [vmem:[%s2487_s12 + $0xa4] ss:$16 sps:$4 sm:$0xff]  }
  0x1f   : > { %1831 = vmatpush3.bf16.msra.mxu0 %v2088_v18  ;;  %v2134_v53 = vld [vmem:[%s2487_s12 + $0xac] ss:$16 sps:$4 sm:$0xff]   ;;  %v2136_v54 = vld [vmem:[%s2487_s12 + $0xa0] ss:$16 sps:$4 sm:$0xff]   ;;  %v2137_v55 = vld [vmem:[%s2487_s12 + $0xa8] ss:$16 sps:$4 sm:$0xff]  }
  0x20   : > { %1943 = vmatpush3.bf16.msra.mxu1 %v2089_v19  ;;  %1832 = vmatprep.subr.bf16.mxu0 %v2090_v20  ;;  %v2138_v56 = vld [vmem:[%s2487_s12 + $0xc4] ss:$16 sps:$4 sm:$0xff]   ;;  %v2140_v57 = vld [vmem:[%s2487_s12 + $0xcc] ss:$16 sps:$4 sm:$0xff]   ;;  %v2142_v58 = vld [vmem:[%s2487_s12 + $0xc0] ss:$16 sps:$4 sm:$0xff]  }
  0x21   : > { %1944 = vmatprep.subr.bf16.mxu1 %v2091_v21  ;;  %v2143_v59 = vld [vmem:[%s2487_s12 + $0xc8] ss:$16 sps:$4 sm:$0xff]   ;;  %v2144_v60 = vld [vmem:[%s2487_s12 + $0xe4] ss:$16 sps:$4 sm:$0xff]   ;;  %v2146_v61 = vld [vmem:[%s2487_s12 + $0xec] ss:$16 sps:$4 sm:$0xff]  }
  0x22   : > { %v2148_v62 = vld [vmem:[%s2487_s12 + $0xe0] ss:$16 sps:$4 sm:$0xff]   ;;  %v2149_v63 = vld [vmem:[%s2487_s12 + $0xe8] ss:$16 sps:$4 sm:$0xff]   ;;  %v2150_v0 = vld [vmem:[%s2487_s12 + $0x104] ss:$16 sps:$4 sm:$0xff]  }
  0x23   : > { %1833 = vmatpush3.bf16.msra.mxu0 %v2092_v22  ;;  %v2152_v1 = vld [vmem:[%s2487_s12 + $0x10c] ss:$16 sps:$4 sm:$0xff]   ;;  %v2154_v2 = vld [vmem:[%s2487_s12 + $0x100] ss:$16 sps:$4 sm:$0xff]   ;;  %v2155_v3 = vld [vmem:[%s2487_s12 + $0x108] ss:$16 sps:$4 sm:$0xff]  }
  0x24   : > { %1945 = vmatpush3.bf16.msra.mxu1 %v2093_v23  ;;  %1834 = vmatprep.subr.bf16.mxu0 %v2094_v24  ;;  %v2156_v4 = vld [vmem:[%s2487_s12 + $0x124] ss:$16 sps:$4 sm:$0xff]   ;;  %v2158_v5 = vld [vmem:[%s2487_s12 + $0x12c] ss:$16 sps:$4 sm:$0xff]   ;;  %v2160_v6 = vld [vmem:[%s2487_s12 + $0x120] ss:$16 sps:$4 sm:$0xff]  }
  0x25   : > { %1946 = vmatprep.subr.bf16.mxu1 %v2095_v25  ;;  %v2161_v7 = vld [vmem:[%s2487_s12 + $0x128] ss:$16 sps:$4 sm:$0xff]   ;;  %v2162_v8 = vld [vmem:[%s2487_s12 + $0x144] ss:$16 sps:$4 sm:$0xff]   ;;  %v2164_v9 = vld [vmem:[%s2487_s12 + $0x14c] ss:$16 sps:$4 sm:$0xff]  }
  0x26   : > { %v2166_v10 = vld [vmem:[%s2487_s12 + $0x140] ss:$16 sps:$4 sm:$0xff]   ;;  %v2167_v11 = vld [vmem:[%s2487_s12 + $0x148] ss:$16 sps:$4 sm:$0xff]   ;;  %v2168_v12 = vld [vmem:[%s2487_s12 + $0x164] ss:$16 sps:$4 sm:$0xff]  }
  0x27   : > { %1835 = vmatpush3.bf16.msra.mxu0 %v2096_v26  ;;  %v2170_v13 = vld [vmem:[%s2487_s12 + $0x16c] ss:$16 sps:$4 sm:$0xff]   ;;  %v2172_v14 = vld [vmem:[%s2487_s12 + $0x160] ss:$16 sps:$4 sm:$0xff]   ;;  %v2173_v15 = vld [vmem:[%s2487_s12 + $0x168] ss:$16 sps:$4 sm:$0xff]  }
  0x28   : > { %1947 = vmatpush3.bf16.msra.mxu1 %v2097_v27  ;;  %1836 = vmatprep.subr.bf16.mxu0 %v2098_v28  ;;  %v2174_v16 = vld [vmem:[%s2487_s12 + $0x184] ss:$16 sps:$4 sm:$0xff]   ;;  %v2176_v17 = vld [vmem:[%s2487_s12 + $0x18c] ss:$16 sps:$4 sm:$0xff]   ;;  %v2178_v18 = vld [vmem:[%s2487_s12 + $0x180] ss:$16 sps:$4 sm:$0xff]  }
  0x29   : > { %1948 = vmatprep.subr.bf16.mxu1 %v2099_v29  ;;  %v2179_v19 = vld [vmem:[%s2487_s12 + $0x188] ss:$16 sps:$4 sm:$0xff]   ;;  %v2180_v20 = vld [vmem:[%s2487_s12 + $0x1a4] ss:$16 sps:$4 sm:$0xff]   ;;  %v2182_v21 = vld [vmem:[%s2487_s12 + $0x1ac] ss:$16 sps:$4 sm:$0xff]  }
  0x2a   : > { %v2184_v22 = vld [vmem:[%s2487_s12 + $0x1a0] ss:$16 sps:$4 sm:$0xff]   ;;  %v2185_v23 = vld [vmem:[%s2487_s12 + $0x1a8] ss:$16 sps:$4 sm:$0xff]   ;;  %v2186_v24 = vld [vmem:[%s2487_s12 + $0x1c4] ss:$16 sps:$4 sm:$0xff]  }
  0x2b   : > { %1837 = vmatpush3.bf16.msra.mxu0 %v2100_v30  ;;  %v2188_v25 = vld [vmem:[%s2487_s12 + $0x1cc] ss:$16 sps:$4 sm:$0xff]   ;;  %v2190_v26 = vld [vmem:[%s2487_s12 + $0x1c0] ss:$16 sps:$4 sm:$0xff]   ;;  %v2191_v27 = vld [vmem:[%s2487_s12 + $0x1c8] ss:$16 sps:$4 sm:$0xff]  }
  0x2c   : > { %1949 = vmatpush3.bf16.msra.mxu1 %v2101_v31  ;;  %v2192_v28 = vld [vmem:[%s2487_s12 + $0x1e4] ss:$16 sps:$4 sm:$0xff]   ;;  %v2194_v29 = vld [vmem:[%s2487_s12 + $0x1ec] ss:$16 sps:$4 sm:$0xff]   ;;  %v2196_v30 = vld [vmem:[%s2487_s12 + $0x1e0] ss:$16 sps:$4 sm:$0xff]  }
  0x2d   : > { %v2197_v31 = vld [vmem:[%s2487_s12 + $0x1e8] ss:$16 sps:$4 sm:$0xff]  }
  0x2e   : > { %884 = vmatmul.mubr.bf16.vlgmr.msra.gmra.mxu0 %v2102_v32 }
  0x2f   : > { %1045 = vmatmul.mubr.bf16.vlgmr.msra.gmra.mxu1 %v2105_v34  ;;  %891 = vmatprep.mubr.bf16.mxu0 %v2108_v36 }
  0x30   : > { %1052 = vmatprep.mubr.bf16.mxu1 %v2110_v37 }
  0x36   : > { %892 = vmatmul.mubr.bf16.gmra.mxu0 %v2112_v38 }
  0x37   : > { %1053 = vmatmul.mubr.bf16.gmra.mxu1 %v2113_v39  ;;  %899 = vmatprep.mubr.bf16.mxu0 %v2114_v40  ;;  %v2562_v39 = vld [vmem:[%s2645_s2] ss:$0 sm:$0xff] }
  0x38   : > { %1060 = vmatprep.mubr.bf16.mxu1 %v2116_v41 }
  0x3e   : > { %900 = vmatmul.mubr.bf16.gmra.mxu0 %v2118_v42 }
  0x3f   : > { %1061 = vmatmul.mubr.bf16.gmra.mxu1 %v2119_v43  ;;  %907 = vmatprep.mubr.bf16.mxu0 %v2120_v44 }
  0x40   : > { %1068 = vmatprep.mubr.bf16.mxu1 %v2122_v45 }
  0x46   : > { %908 = vmatmul.mubr.bf16.gmra.mxu0 %v2124_v46 }
  0x47   : > { %1069 = vmatmul.mubr.bf16.gmra.mxu1 %v2125_v47  ;;  %915 = vmatprep.mubr.bf16.mxu0 %v2126_v48 }
  0x48   : > { %1076 = vmatprep.mubr.bf16.mxu1 %v2128_v49 }
  0x4e   : > { %916 = vmatmul.mubr.bf16.gmra.mxu0 %v2130_v50 }
  0x4f   : > { %1077 = vmatmul.mubr.bf16.gmra.mxu1 %v2131_v51  ;;  %923 = vmatprep.mubr.bf16.mxu0 %v2132_v52 }
  0x50   : > { %1084 = vmatprep.mubr.bf16.mxu1 %v2134_v53 }
  0x56   : > { %924 = vmatmul.mubr.bf16.gmra.mxu0 %v2136_v54 }
  0x57   : > { %1085 = vmatmul.mubr.bf16.gmra.mxu1 %v2137_v55  ;;  %931 = vmatprep.mubr.bf16.mxu0 %v2138_v56 }
  0x58   : > { %1092 = vmatprep.mubr.bf16.mxu1 %v2140_v57 }
  0x5e   : > { %932 = vmatmul.mubr.bf16.gmra.mxu0 %v2142_v58 }
  0x5f   : > { %1093 = vmatmul.mubr.bf16.gmra.mxu1 %v2143_v59  ;;  %939 = vmatprep.mubr.bf16.mxu0 %v2144_v60 }
  0x60   : > { %1100 = vmatprep.mubr.bf16.mxu1 %v2146_v61 }
  0x66   : > { %940 = vmatmul.mubr.bf16.gmra.mxu0 %v2148_v62 }
  0x67   : > { %1101 = vmatmul.mubr.bf16.gmra.mxu1 %v2149_v63  ;;  %947 = vmatprep.mubr.bf16.mxu0 %v2150_v0 }
  0x68   : > { %1108 = vmatprep.mubr.bf16.mxu1 %v2152_v1 }
  0x6e   : > { %948 = vmatmul.mubr.bf16.gmra.mxu0 %v2154_v2 }
  0x6f   : > { %1109 = vmatmul.mubr.bf16.gmra.mxu1 %v2155_v3  ;;  %955 = vmatprep.mubr.bf16.mxu0 %v2156_v4 }
  0x70   : > { %1116 = vmatprep.mubr.bf16.mxu1 %v2158_v5 }
  0x76   : > { %956 = vmatmul.mubr.bf16.gmra.mxu0 %v2160_v6 }
  0x77   : > { %1117 = vmatmul.mubr.bf16.gmra.mxu1 %v2161_v7  ;;  %963 = vmatprep.mubr.bf16.mxu0 %v2162_v8 }
  0x78   : > { %1124 = vmatprep.mubr.bf16.mxu1 %v2164_v9 }
  0x7e   : > { %964 = vmatmul.mubr.bf16.gmra.mxu0 %v2166_v10 }
  0x7f   : > { %1125 = vmatmul.mubr.bf16.gmra.mxu1 %v2167_v11  ;;  %971 = vmatprep.mubr.bf16.mxu0 %v2168_v12 }
  0x80   : > { %1132 = vmatprep.mubr.bf16.mxu1 %v2170_v13 }
  0x86   : > { %972 = vmatmul.mubr.bf16.gmra.mxu0 %v2172_v14 }
  0x87   : > { %1133 = vmatmul.mubr.bf16.gmra.mxu1 %v2173_v15  ;;  %979 = vmatprep.mubr.bf16.mxu0 %v2174_v16 }
  0x88   : > { %1140 = vmatprep.mubr.bf16.mxu1 %v2176_v17 }
  0x8e   : > { %980 = vmatmul.mubr.bf16.gmra.mxu0 %v2178_v18 }
  0x8f   : > { %1141 = vmatmul.mubr.bf16.gmra.mxu1 %v2179_v19  ;;  %987 = vmatprep.mubr.bf16.mxu0 %v2180_v20 }
  0x90   : > { %1148 = vmatprep.mubr.bf16.mxu1 %v2182_v21 }
  0x96   : > { %988 = vmatmul.mubr.bf16.gmra.mxu0 %v2184_v22 }
  0x97   : > { %1149 = vmatmul.mubr.bf16.gmra.mxu1 %v2185_v23  ;;  %995 = vmatprep.mubr.bf16.mxu0 %v2186_v24 }
  0x98   : > { %1156 = vmatprep.mubr.bf16.mxu1 %v2188_v25 }
  0x9e   : > { %996 = vmatmul.mubr.bf16.gmra.mxu0 %v2190_v26 }
  0x9f   : > { %1157 = vmatmul.mubr.bf16.gmra.mxu1 %v2191_v27  ;;  %1003 = vmatprep.mubr.bf16.mxu0 %v2192_v28 }
  0xa0   : > { %1164 = vmatprep.mubr.bf16.mxu1 %v2194_v29 }
  0xa6   : > { %1004 = vmatmul.mubr.bf16.gmra.mxu0 %v2196_v30 }
  0xa7   : > { %1165 = vmatmul.mubr.bf16.gmra.mxu1 %v2197_v31 }
  0xee   : > { %v1838_v32 = vpop.f32.mrf.mxu0 }
  0xef   : > { %v1950_v33 = vpop.f32.mrf.mxu1 }
  0xf0   : > { %v1839_v34 = vpop.f32.mrf.mxu0 }
  0xf1   : > { %v1840_v35 = vadd.f32 %v1839_v34, %v1838_v32  ;;  %v1951_v36 = vpop.f32.mrf.mxu1 }
  0xf2   : > { %v1952_v37 = vadd.f32 %v1951_v36, %v1950_v33  ;;  %v1841_v38 = vpop.f32.mrf.mxu0 }
  0xf3   : > { %v1953_v40 = vpop.f32.mrf.mxu1 }
  0xf4   : > { %v1047_v41 = vadd.f32 %v1952_v37, %v1840_v35  ;;  %v1842_v42 = vpop.f32.mrf.mxu0 }
  0xf5   : > { %v1843_v43 = vadd.f32 %v1842_v42, %v1841_v38  ;;  %v1954_v44 = vpop.f32.mrf.mxu1 }
  0xf6   : > { %v1351_v45 = vadd.f32 %v2562_v39, %v1047_v41  ;;  %v1955_v46 = vadd.f32 %v1954_v44, %v1953_v40  ;;  %v1844_v47 = vpop.f32.mrf.mxu0 }
  0xf7   : > { %v1956_v48 = vpop.f32.mrf.mxu1 }
  0xf8   : > { %v1787_v49 = vmul.f32 -1.442695, %v1351_v45  ;;  %v1050_v50 = vadd.f32 %v1955_v46, %v1843_v43  ;;  %v1845_v51 = vpop.f32.mrf.mxu0 }
  0xf9   : > { %v1846_v52 = vadd.f32 %v1845_v51, %v1844_v47  ;;  %v1957_v53 = vpop.f32.mrf.mxu1 }
  0xfa   : > { %2198 = vpow2.f32 %v1787_v49  ;;  %v1352_v54 = vadd.f32 %v2562_v39, %v1050_v50  ;;  %v1958_v55 = vadd.f32 %v1957_v53, %v1956_v48  ;;  %v1847_v56 = vpop.f32.mrf.mxu0 }
  0xfb   : > { %v1959_v57 = vpop.f32.mrf.mxu1 }
  0xfc   : > { %v1788_v58 = vmul.f32 -1.442695, %v1352_v54  ;;  %v1055_v59 = vadd.f32 %v1958_v55, %v1846_v52  ;;  %v1848_v60 = vpop.f32.mrf.mxu0 }
  0xfd   : > { %v1849_v61 = vadd.f32 %v1848_v60, %v1847_v56  ;;  %v1960_v62 = vpop.f32.mrf.mxu1 }
  0xfe   : > { %2200 = vpow2.f32 %v1788_v58  ;;  %v1353_v63 = vadd.f32 %v2562_v39, %v1055_v59  ;;  %v1961_v0 = vadd.f32 %v1960_v62, %v1959_v57  ;;  %v1850_v1 = vpop.f32.mrf.mxu0 }
  0xff   : > { %v1962_v2 = vpop.f32.mrf.mxu1 }
 0x100   : > { %v1789_v3 = vmul.f32 -1.442695, %v1353_v63  ;;  %v1058_v4 = vadd.f32 %v1961_v0, %v1849_v61  ;;  %v1851_v5 = vpop.f32.mrf.mxu0 }
 0x101   : > { %v1852_v6 = vadd.f32 %v1851_v5, %v1850_v1  ;;  %v1963_v7 = vpop.f32.mrf.mxu1 }
 0x102   : > { %2202 = vpow2.f32 %v1789_v3  ;;  %v1354_v8 = vadd.f32 %v2562_v39, %v1058_v4  ;;  %v1964_v9 = vadd.f32 %v1963_v7, %v1962_v2  ;;  %v1853_v10 = vpop.f32.mrf.mxu0 }
 0x103   : > { %v1965_v11 = vpop.f32.mrf.mxu1 }
 0x104   : > { %v1790_v12 = vmul.f32 -1.442695, %v1354_v8  ;;  %v1063_v13 = vadd.f32 %v1964_v9, %v1852_v6  ;;  %v1854_v14 = vpop.f32.mrf.mxu0 }
 0x105   : > { %v1855_v15 = vadd.f32 %v1854_v14, %v1853_v10  ;;  %v1966_v16 = vpop.f32.mrf.mxu1 }
 0x106   : > { %2204 = vpow2.f32 %v1790_v12  ;;  %v1355_v17 = vadd.f32 %v2562_v39, %v1063_v13  ;;  %v1967_v18 = vadd.f32 %v1966_v16, %v1965_v11  ;;  %v1856_v19 = vpop.f32.mrf.mxu0 }
 0x107   : > { %v2199_v20 = vpop.eup %2198  ;;  %v1968_v21 = vpop.f32.mrf.mxu1 }
 0x108   : > { %v1479_v22 = vadd.f32 1.0, %v2199_v20  ;;  %v1791_v23 = vmul.f32 -1.442695, %v1355_v17  ;;  %v1066_v24 = vadd.f32 %v1967_v18, %v1855_v15  ;;  %v1857_v25 = vpop.f32.mrf.mxu0 }
 0x109   : > { %v1858_v26 = vadd.f32 %v1857_v25, %v1856_v19  ;;  %v1969_v27 = vpop.f32.mrf.mxu1 }
 0x10a   : > { %2206 = vrcp.f32 %v1479_v22  ;;  %v1356_v28 = vadd.f32 %v2562_v39, %v1066_v24  ;;  %v1970_v29 = vadd.f32 %v1969_v27, %v1968_v21  ;;  %v1859_v30 = vpop.f32.mrf.mxu0 }
 0x10b   : > { %v2201_v31 = vpop.eup %2200  ;;  %2208 = vpow2.f32 %v1791_v23  ;;  %v1971_v32 = vpop.f32.mrf.mxu1 }
 0x10c   : > { %v1480_v33 = vadd.f32 1.0, %v2201_v31  ;;  %v1792_v34 = vmul.f32 -1.442695, %v1356_v28  ;;  %v1071_v35 = vadd.f32 %v1970_v29, %v1858_v26  ;;  %v1860_v36 = vpop.f32.mrf.mxu0 }
 0x10d   : > { %v1861_v37 = vadd.f32 %v1860_v36, %v1859_v30  ;;  %v1972_v38 = vpop.f32.mrf.mxu1 }
 0x10e   : > { %2210 = vrcp.f32 %v1480_v33  ;;  %v1357_v40 = vadd.f32 %v2562_v39, %v1071_v35  ;;  %v1973_v41 = vadd.f32 %v1972_v38, %v1971_v32  ;;  %v1862_v42 = vpop.f32.mrf.mxu0 }
 0x10f   : > { %v2203_v43 = vpop.eup %2202  ;;  %2212 = vpow2.f32 %v1792_v34  ;;  %v1974_v44 = vpop.f32.mrf.mxu1 }
 0x110   : > { %v1481_v45 = vadd.f32 1.0, %v2203_v43  ;;  %v1793_v46 = vmul.f32 -1.442695, %v1357_v40  ;;  %v1074_v47 = vadd.f32 %v1973_v41, %v1861_v37  ;;  %v1863_v48 = vpop.f32.mrf.mxu0 }
 0x111   : > { %v1864_v49 = vadd.f32 %v1863_v48, %v1862_v42  ;;  %v1975_v50 = vpop.f32.mrf.mxu1 }
 0x112   : > { %2214 = vrcp.f32 %v1481_v45  ;;  %v1358_v51 = vadd.f32 %v2562_v39, %v1074_v47  ;;  %v1976_v52 = vadd.f32 %v1975_v50, %v1974_v44  ;;  %v1865_v53 = vpop.f32.mrf.mxu0 }
 0x113   : > { %v2205_v54 = vpop.eup %2204  ;;  %2216 = vpow2.f32 %v1793_v46  ;;  %v1977_v55 = vpop.f32.mrf.mxu1 }
 0x114   : > { %v1482_v56 = vadd.f32 1.0, %v2205_v54  ;;  %v1794_v57 = vmul.f32 -1.442695, %v1358_v51  ;;  %v1079_v58 = vadd.f32 %v1976_v52, %v1864_v49  ;;  %v1866_v59 = vpop.f32.mrf.mxu0 }
 0x115   : > { %v1867_v60 = vadd.f32 %v1866_v59, %v1865_v53  ;;  %v1978_v61 = vpop.f32.mrf.mxu1 }
 0x116   : > { %2218 = vrcp.f32 %v1482_v56  ;;  %v1359_v62 = vadd.f32 %v2562_v39, %v1079_v58  ;;  %v1979_v63 = vadd.f32 %v1978_v61, %v1977_v55  ;;  %v1868_v0 = vpop.f32.mrf.mxu0 }
 0x117   : > { %v2207_v1 = vpop.eup %2206  ;;  %2220 = vpow2.f32 %v1794_v57  ;;  %v1980_v2 = vpop.f32.mrf.mxu1 }
 0x118   : > { %v2209_v3 = vpop.eup %2208  ;;  %1575 = vst [vmem:[%s2576_s20] sm:$0xff] %v2207_v1  ;;  %v1795_v4 = vmul.f32 -1.442695, %v1359_v62  ;;  %v1082_v5 = vadd.f32 %v1979_v63, %v1867_v60  ;;  %v1869_v6 = vpop.f32.mrf.mxu0 }
 0x119   : > { %v1483_v7 = vadd.f32 1.0, %v2209_v3  ;;  %v1870_v8 = vadd.f32 %v1869_v6, %v1868_v0  ;;  %v1981_v9 = vpop.f32.mrf.mxu1 }
 0x11a   : > { %2222 = vpow2.f32 %v1795_v4  ;;  %v1360_v10 = vadd.f32 %v2562_v39, %v1082_v5  ;;  %v1982_v11 = vadd.f32 %v1981_v9, %v1980_v2  ;;  %v1871_v12 = vpop.f32.mrf.mxu0 }
 0x11b   : > { %v2211_v13 = vpop.eup %2210  ;;  %2224 = vrcp.f32 %v1483_v7  ;;  %v1983_v14 = vpop.f32.mrf.mxu1 }
 0x11c   : > { %v2213_v15 = vpop.eup %2212  ;;  %1576 = vst [vmem:[%s2576_s20 + $0x8] sm:$0xff] %v2211_v13  ;;  %v1796_v16 = vmul.f32 -1.442695, %v1360_v10  ;;  %v1087_v17 = vadd.f32 %v1982_v11, %v1870_v8  ;;  %v1872_v18 = vpop.f32.mrf.mxu0 }
 0x11d   : > { %v1484_v19 = vadd.f32 1.0, %v2213_v15  ;;  %v1873_v20 = vadd.f32 %v1872_v18, %v1871_v12  ;;  %v1984_v21 = vpop.f32.mrf.mxu1 }
 0x11e   : > { %2226 = vpow2.f32 %v1796_v16  ;;  %v1361_v22 = vadd.f32 %v2562_v39, %v1087_v17  ;;  %v1985_v23 = vadd.f32 %v1984_v21, %v1983_v14  ;;  %v1874_v24 = vpop.f32.mrf.mxu0 }
 0x11f   : > { %v2215_v25 = vpop.eup %2214  ;;  %2228 = vrcp.f32 %v1484_v19  ;;  %v1986_v26 = vpop.f32.mrf.mxu1 }
 0x120   : > { %v2217_v27 = vpop.eup %2216  ;;  %1577 = vst [vmem:[%s2576_s20 + $0x10] sm:$0xff] %v2215_v25  ;;  %v1797_v28 = vmul.f32 -1.442695, %v1361_v22  ;;  %v1090_v29 = vadd.f32 %v1985_v23, %v1873_v20  ;;  %v1875_v30 = vpop.f32.mrf.mxu0 }
 0x121   : > { %v1485_v31 = vadd.f32 1.0, %v2217_v27  ;;  %v1876_v32 = vadd.f32 %v1875_v30, %v1874_v24  ;;  %v1987_v33 = vpop.f32.mrf.mxu1 }
 0x122   : > { %2230 = vpow2.f32 %v1797_v28  ;;  %v1362_v34 = vadd.f32 %v2562_v39, %v1090_v29  ;;  %v1988_v35 = vadd.f32 %v1987_v33, %v1986_v26  ;;  %v1877_v36 = vpop.f32.mrf.mxu0 }
 0x123   : > { %v2219_v37 = vpop.eup %2218  ;;  %2232 = vrcp.f32 %v1485_v31  ;;  %v1989_v38 = vpop.f32.mrf.mxu1 }
 0x124   : > { %v2221_v40 = vpop.eup %2220  ;;  %1578 = vst [vmem:[%s2576_s20 + $0x18] sm:$0xff] %v2219_v37  ;;  %v1798_v41 = vmul.f32 -1.442695, %v1362_v34  ;;  %v1095_v42 = vadd.f32 %v1988_v35, %v1876_v32  ;;  %v1878_v43 = vpop.f32.mrf.mxu0 }
 0x125   : > { %v1486_v44 = vadd.f32 1.0, %v2221_v40  ;;  %v1879_v45 = vadd.f32 %v1878_v43, %v1877_v36  ;;  %v1990_v46 = vpop.f32.mrf.mxu1 }
 0x126   : > { %2234 = vpow2.f32 %v1798_v41  ;;  %v1363_v47 = vadd.f32 %v2562_v39, %v1095_v42  ;;  %v1991_v48 = vadd.f32 %v1990_v46, %v1989_v38  ;;  %v1880_v49 = vpop.f32.mrf.mxu0 }
 0x127   : > { %v2223_v50 = vpop.eup %2222  ;;  %2236 = vrcp.f32 %v1486_v44  ;;  %v1992_v51 = vpop.f32.mrf.mxu1 }
 0x128   : > { %v2225_v52 = vpop.eup %2224  ;;  %v1487_v53 = vadd.f32 1.0, %v2223_v50  ;;  %v1799_v54 = vmul.f32 -1.442695, %v1363_v47  ;;  %v1098_v55 = vadd.f32 %v1991_v48, %v1879_v45  ;;  %v1881_v56 = vpop.f32.mrf.mxu0 }
 0x129   : > { %1579 = vst [vmem:[%s2576_s20 + $0x20] sm:$0xff] %v2225_v52  ;;  %v1882_v57 = vadd.f32 %v1881_v56, %v1880_v49  ;;  %v1993_v58 = vpop.f32.mrf.mxu1 }
 0x12a   : > { %2238 = vrcp.f32 %v1487_v53  ;;  %v1364_v59 = vadd.f32 %v2562_v39, %v1098_v55  ;;  %v1994_v60 = vadd.f32 %v1993_v58, %v1992_v51  ;;  %v1883_v61 = vpop.f32.mrf.mxu0 }
 0x12b   : > { %v2227_v62 = vpop.eup %2226  ;;  %2240 = vpow2.f32 %v1799_v54  ;;  %v1995_v63 = vpop.f32.mrf.mxu1 }
 0x12c   : > { %v2229_v0 = vpop.eup %2228  ;;  %v1488_v1 = vadd.f32 1.0, %v2227_v62  ;;  %v1800_v2 = vmul.f32 -1.442695, %v1364_v59  ;;  %v1103_v3 = vadd.f32 %v1994_v60, %v1882_v57  ;;  %v1884_v4 = vpop.f32.mrf.mxu0 }
 0x12d   : > { %1580 = vst [vmem:[%s2576_s20 + $0x28] sm:$0xff] %v2229_v0  ;;  %v1885_v5 = vadd.f32 %v1884_v4, %v1883_v61  ;;  %v1996_v6 = vpop.f32.mrf.mxu1 }
 0x12e   : > { %2242 = vrcp.f32 %v1488_v1  ;;  %v1365_v7 = vadd.f32 %v2562_v39, %v1103_v3  ;;  %v1997_v8 = vadd.f32 %v1996_v6, %v1995_v63  ;;  %v1886_v9 = vpop.f32.mrf.mxu0 }
 0x12f   : > { %v2231_v10 = vpop.eup %2230  ;;  %2244 = vpow2.f32 %v1800_v2  ;;  %v1998_v11 = vpop.f32.mrf.mxu1 }
 0x130   : > { %v2233_v12 = vpop.eup %2232  ;;  %v1489_v13 = vadd.f32 1.0, %v2231_v10  ;;  %v1801_v14 = vmul.f32 -1.442695, %v1365_v7  ;;  %v1106_v15 = vadd.f32 %v1997_v8, %v1885_v5  ;;  %v1887_v16 = vpop.f32.mrf.mxu0 }
 0x131   : > { %1581 = vst [vmem:[%s2576_s20 + $0x30] sm:$0xff] %v2233_v12  ;;  %v1888_v17 = vadd.f32 %v1887_v16, %v1886_v9  ;;  %v1999_v18 = vpop.f32.mrf.mxu1 }
 0x132   : > { %2246 = vrcp.f32 %v1489_v13  ;;  %v1366_v19 = vadd.f32 %v2562_v39, %v1106_v15  ;;  %v2000_v20 = vadd.f32 %v1999_v18, %v1998_v11  ;;  %v1889_v21 = vpop.f32.mrf.mxu0 }
 0x133   : > { %v2235_v22 = vpop.eup %2234  ;;  %2248 = vpow2.f32 %v1801_v14  ;;  %v2001_v23 = vpop.f32.mrf.mxu1 }
 0x134   : > { %v2237_v24 = vpop.eup %2236  ;;  %v1490_v25 = vadd.f32 1.0, %v2235_v22  ;;  %v1802_v26 = vmul.f32 -1.442695, %v1366_v19  ;;  %v1111_v27 = vadd.f32 %v2000_v20, %v1888_v17  ;;  %v1890_v28 = vpop.f32.mrf.mxu0 }
 0x135   : > { %1582 = vst [vmem:[%s2576_s20 + $0x38] sm:$0xff] %v2237_v24  ;;  %v1891_v29 = vadd.f32 %v1890_v28, %v1889_v21  ;;  %v2002_v30 = vpop.f32.mrf.mxu1 }
 0x136   : > { %2250 = vrcp.f32 %v1490_v25  ;;  %v1367_v31 = vadd.f32 %v2562_v39, %v1111_v27  ;;  %v2003_v32 = vadd.f32 %v2002_v30, %v2001_v23  ;;  %v1892_v33 = vpop.f32.mrf.mxu0 }
 0x137   : > { %v2239_v34 = vpop.eup %2238  ;;  %2252 = vpow2.f32 %v1802_v26  ;;  %v2004_v35 = vpop.f32.mrf.mxu1 }
 0x138   : > { %v2241_v36 = vpop.eup %2240  ;;  %1583 = vst [vmem:[%s2576_s20 + $0x40] sm:$0xff] %v2239_v34  ;;  %v1803_v37 = vmul.f32 -1.442695, %v1367_v31  ;;  %v1114_v38 = vadd.f32 %v2003_v32, %v1891_v29  ;;  %v1893_v40 = vpop.f32.mrf.mxu0 }
 0x139   : > { %v1491_v41 = vadd.f32 1.0, %v2241_v36  ;;  %v1894_v42 = vadd.f32 %v1893_v40, %v1892_v33  ;;  %v2005_v43 = vpop.f32.mrf.mxu1 }
 0x13a   : > { %2254 = vpow2.f32 %v1803_v37  ;;  %v1368_v44 = vadd.f32 %v2562_v39, %v1114_v38  ;;  %v2006_v45 = vadd.f32 %v2005_v43, %v2004_v35  ;;  %v1895_v46 = vpop.f32.mrf.mxu0 }
 0x13b   : > { %v2243_v47 = vpop.eup %2242  ;;  %2256 = vrcp.f32 %v1491_v41  ;;  %v2007_v48 = vpop.f32.mrf.mxu1 }
 0x13c   : > { %v2245_v49 = vpop.eup %2244  ;;  %1584 = vst [vmem:[%s2576_s20 + $0x48] sm:$0xff] %v2243_v47  ;;  %v1804_v50 = vmul.f32 -1.442695, %v1368_v44  ;;  %v1119_v51 = vadd.f32 %v2006_v45, %v1894_v42  ;;  %v1896_v52 = vpop.f32.mrf.mxu0 }
 0x13d   : > { %v1492_v53 = vadd.f32 1.0, %v2245_v49  ;;  %v1897_v54 = vadd.f32 %v1896_v52, %v1895_v46  ;;  %v2008_v55 = vpop.f32.mrf.mxu1 }
 0x13e   : > { %2258 = vpow2.f32 %v1804_v50  ;;  %v1369_v56 = vadd.f32 %v2562_v39, %v1119_v51  ;;  %v2009_v57 = vadd.f32 %v2008_v55, %v2007_v48  ;;  %v1898_v58 = vpop.f32.mrf.mxu0 }
 0x13f   : > { %v2247_v59 = vpop.eup %2246  ;;  %2260 = vrcp.f32 %v1492_v53  ;;  %v2010_v60 = vpop.f32.mrf.mxu1 }
 0x140   : > { %v2249_v61 = vpop.eup %2248  ;;  %1585 = vst [vmem:[%s2576_s20 + $0x50] sm:$0xff] %v2247_v59  ;;  %v1805_v62 = vmul.f32 -1.442695, %v1369_v56  ;;  %v1122_v63 = vadd.f32 %v2009_v57, %v1897_v54  ;;  %v1899_v0 = vpop.f32.mrf.mxu0 }
 0x141   : > { %v1493_v1 = vadd.f32 1.0, %v2249_v61  ;;  %v1900_v2 = vadd.f32 %v1899_v0, %v1898_v58  ;;  %v2011_v3 = vpop.f32.mrf.mxu1 }
 0x142   : > { %2262 = vpow2.f32 %v1805_v62  ;;  %v1370_v4 = vadd.f32 %v2562_v39, %v1122_v63  ;;  %v2012_v5 = vadd.f32 %v2011_v3, %v2010_v60  ;;  %v1901_v6 = vpop.f32.mrf.mxu0 }
 0x143   : > { %v2251_v7 = vpop.eup %2250  ;;  %2264 = vrcp.f32 %v1493_v1  ;;  %v2013_v8 = vpop.f32.mrf.mxu1 }
 0x144   : > { %v2253_v9 = vpop.eup %2252  ;;  %1586 = vst [vmem:[%s2576_s20 + $0x58] sm:$0xff] %v2251_v7  ;;  %v1806_v10 = vmul.f32 -1.442695, %v1370_v4  ;;  %v1127_v11 = vadd.f32 %v2012_v5, %v1900_v2  ;;  %v1902_v12 = vpop.f32.mrf.mxu0 }
 0x145   : > { %v1494_v13 = vadd.f32 1.0, %v2253_v9  ;;  %v1903_v14 = vadd.f32 %v1902_v12, %v1901_v6  ;;  %v2014_v15 = vpop.f32.mrf.mxu1 }
 0x146   : > { %2266 = vpow2.f32 %v1806_v10  ;;  %v1371_v16 = vadd.f32 %v2562_v39, %v1127_v11  ;;  %v2015_v17 = vadd.f32 %v2014_v15, %v2013_v8  ;;  %v1904_v18 = vpop.f32.mrf.mxu0 }
 0x147   : > { %v2255_v19 = vpop.eup %2254  ;;  %2268 = vrcp.f32 %v1494_v13  ;;  %v2016_v20 = vpop.f32.mrf.mxu1 }
 0x148   : > { %v2257_v21 = vpop.eup %2256  ;;  %v1495_v22 = vadd.f32 1.0, %v2255_v19  ;;  %v1807_v23 = vmul.f32 -1.442695, %v1371_v16  ;;  %v1130_v24 = vadd.f32 %v2015_v17, %v1903_v14  ;;  %v1905_v25 = vpop.f32.mrf.mxu0 }
 0x149   : > { %1587 = vst [vmem:[%s2576_s20 + $0x60] sm:$0xff] %v2257_v21  ;;  %v1906_v26 = vadd.f32 %v1905_v25, %v1904_v18  ;;  %v2017_v27 = vpop.f32.mrf.mxu1 }
 0x14a   : > { %2270 = vrcp.f32 %v1495_v22  ;;  %v1372_v28 = vadd.f32 %v2562_v39, %v1130_v24  ;;  %v2018_v29 = vadd.f32 %v2017_v27, %v2016_v20  ;;  %v1907_v30 = vpop.f32.mrf.mxu0 }
 0x14b   : > { %v2259_v31 = vpop.eup %2258  ;;  %2272 = vpow2.f32 %v1807_v23  ;;  %v2019_v32 = vpop.f32.mrf.mxu1 }
 0x14c   : > { %v2261_v33 = vpop.eup %2260  ;;  %v1496_v34 = vadd.f32 1.0, %v2259_v31  ;;  %v1808_v35 = vmul.f32 -1.442695, %v1372_v28  ;;  %v1135_v36 = vadd.f32 %v2018_v29, %v1906_v26  ;;  %v1908_v37 = vpop.f32.mrf.mxu0 }
 0x14d   : > { %1588 = vst [vmem:[%s2576_s20 + $0x68] sm:$0xff] %v2261_v33  ;;  %v1909_v38 = vadd.f32 %v1908_v37, %v1907_v30  ;;  %v2020_v40 = vpop.f32.mrf.mxu1 }
 0x14e   : > { %2274 = vrcp.f32 %v1496_v34  ;;  %v1373_v41 = vadd.f32 %v2562_v39, %v1135_v36  ;;  %v2021_v42 = vadd.f32 %v2020_v40, %v2019_v32  ;;  %v1910_v43 = vpop.f32.mrf.mxu0 }
 0x14f   : > { %v2263_v44 = vpop.eup %2262  ;;  %2276 = vpow2.f32 %v1808_v35  ;;  %v2022_v45 = vpop.f32.mrf.mxu1 }
 0x150   : > { %v2265_v46 = vpop.eup %2264  ;;  %v1497_v47 = vadd.f32 1.0, %v2263_v44  ;;  %v1809_v48 = vmul.f32 -1.442695, %v1373_v41  ;;  %v1138_v49 = vadd.f32 %v2021_v42, %v1909_v38  ;;  %v1911_v50 = vpop.f32.mrf.mxu0 }
 0x151   : > { %1589 = vst [vmem:[%s2576_s20 + $0x70] sm:$0xff] %v2265_v46  ;;  %v1912_v51 = vadd.f32 %v1911_v50, %v1910_v43  ;;  %v2023_v52 = vpop.f32.mrf.mxu1 }
 0x152   : > { %2278 = vrcp.f32 %v1497_v47  ;;  %v1374_v53 = vadd.f32 %v2562_v39, %v1138_v49  ;;  %v2024_v54 = vadd.f32 %v2023_v52, %v2022_v45  ;;  %v1913_v55 = vpop.f32.mrf.mxu0 }
 0x153   : > { %v2267_v56 = vpop.eup %2266  ;;  %2280 = vpow2.f32 %v1809_v48  ;;  %v2025_v57 = vpop.f32.mrf.mxu1 }
 0x154   : > { %v2269_v58 = vpop.eup %2268  ;;  %v1498_v59 = vadd.f32 1.0, %v2267_v56  ;;  %v1810_v60 = vmul.f32 -1.442695, %v1374_v53  ;;  %v1143_v61 = vadd.f32 %v2024_v54, %v1912_v51  ;;  %v1914_v62 = vpop.f32.mrf.mxu0 }
 0x155   : > { %1590 = vst [vmem:[%s2576_s20 + $0x78] sm:$0xff] %v2269_v58  ;;  %v1915_v63 = vadd.f32 %v1914_v62, %v1913_v55  ;;  %v2026_v0 = vpop.f32.mrf.mxu1 }
 0x156   : > { %2282 = vrcp.f32 %v1498_v59  ;;  %v1375_v1 = vadd.f32 %v2562_v39, %v1143_v61  ;;  %v2027_v2 = vadd.f32 %v2026_v0, %v2025_v57  ;;  %v1916_v3 = vpop.f32.mrf.mxu0 }
 0x157   : > { %v2271_v4 = vpop.eup %2270  ;;  %2284 = vpow2.f32 %v1810_v60  ;;  %v2028_v5 = vpop.f32.mrf.mxu1 }
 0x158   : > { %v2273_v6 = vpop.eup %2272  ;;  %1591 = vst [vmem:[%s2576_s20 + $0x80] sm:$0xff] %v2271_v4  ;;  %v1811_v7 = vmul.f32 -1.442695, %v1375_v1  ;;  %v1146_v8 = vadd.f32 %v2027_v2, %v1915_v63  ;;  %v1917_v9 = vpop.f32.mrf.mxu0 }
 0x159   : > { %v1499_v10 = vadd.f32 1.0, %v2273_v6  ;;  %v1918_v11 = vadd.f32 %v1917_v9, %v1916_v3  ;;  %v2029_v12 = vpop.f32.mrf.mxu1 }
 0x15a   : > { %2286 = vpow2.f32 %v1811_v7  ;;  %v1376_v13 = vadd.f32 %v2562_v39, %v1146_v8  ;;  %v2030_v14 = vadd.f32 %v2029_v12, %v2028_v5  ;;  %v1919_v15 = vpop.f32.mrf.mxu0 }
 0x15b   : > { %v2275_v16 = vpop.eup %2274  ;;  %2288 = vrcp.f32 %v1499_v10  ;;  %v2031_v17 = vpop.f32.mrf.mxu1 }
 0x15c   : > { %v2277_v18 = vpop.eup %2276  ;;  %1592 = vst [vmem:[%s2576_s20 + $0x88] sm:$0xff] %v2275_v16  ;;  %v1812_v19 = vmul.f32 -1.442695, %v1376_v13  ;;  %v1151_v20 = vadd.f32 %v2030_v14, %v1918_v11  ;;  %v1920_v21 = vpop.f32.mrf.mxu0 }
 0x15d   : > { %v1500_v22 = vadd.f32 1.0, %v2277_v18  ;;  %v1921_v23 = vadd.f32 %v1920_v21, %v1919_v15  ;;  %v2032_v24 = vpop.f32.mrf.mxu1 }
 0x15e   : > { %2290 = vpow2.f32 %v1812_v19  ;;  %v1377_v25 = vadd.f32 %v2562_v39, %v1151_v20  ;;  %v2033_v26 = vadd.f32 %v2032_v24, %v2031_v17  ;;  %v1922_v27 = vpop.f32.mrf.mxu0 }
 0x15f   : > { %v2279_v28 = vpop.eup %2278  ;;  %2292 = vrcp.f32 %v1500_v22  ;;  %v2034_v29 = vpop.f32.mrf.mxu1 }
 0x160   : > { %v2281_v30 = vpop.eup %2280  ;;  %1593 = vst [vmem:[%s2576_s20 + $0x90] sm:$0xff] %v2279_v28  ;;  %v1813_v31 = vmul.f32 -1.442695, %v1377_v25  ;;  %v1154_v32 = vadd.f32 %v2033_v26, %v1921_v23  ;;  %v1923_v33 = vpop.f32.mrf.mxu0 }
 0x161   : > { %v1501_v34 = vadd.f32 1.0, %v2281_v30  ;;  %v1924_v35 = vadd.f32 %v1923_v33, %v1922_v27  ;;  %v2035_v36 = vpop.f32.mrf.mxu1 }
 0x162   : > { %2294 = vpow2.f32 %v1813_v31  ;;  %v1378_v37 = vadd.f32 %v2562_v39, %v1154_v32  ;;  %v2036_v38 = vadd.f32 %v2035_v36, %v2034_v29  ;;  %v1925_v40 = vpop.f32.mrf.mxu0 }
 0x163   : > { %v2283_v41 = vpop.eup %2282  ;;  %2296 = vrcp.f32 %v1501_v34  ;;  %v2037_v42 = vpop.f32.mrf.mxu1 }
 0x164   : > { %v2285_v43 = vpop.eup %2284  ;;  %1594 = vst [vmem:[%s2576_s20 + $0x98] sm:$0xff] %v2283_v41  ;;  %v1814_v44 = vmul.f32 -1.442695, %v1378_v37  ;;  %v1159_v45 = vadd.f32 %v2036_v38, %v1924_v35  ;;  %v1926_v46 = vpop.f32.mrf.mxu0 }
 0x165   : > { %v1502_v47 = vadd.f32 1.0, %v2285_v43  ;;  %v1927_v48 = vadd.f32 %v1926_v46, %v1925_v40  ;;  %v2038_v49 = vpop.f32.mrf.mxu1 }
 0x166   : > { %2298 = vpow2.f32 %v1814_v44  ;;  %v1379_v50 = vadd.f32 %v2562_v39, %v1159_v45  ;;  %v2039_v51 = vadd.f32 %v2038_v49, %v2037_v42  ;;  %v1928_v52 = vpop.f32.mrf.mxu0 }
 0x167   : > { %v2287_v53 = vpop.eup %2286  ;;  %2300 = vrcp.f32 %v1502_v47  ;;  %v2040_v54 = vpop.f32.mrf.mxu1 }
 0x168   : > { %v2289_v55 = vpop.eup %2288  ;;  %v1503_v56 = vadd.f32 1.0, %v2287_v53  ;;  %v1815_v57 = vmul.f32 -1.442695, %v1379_v50  ;;  %v1162_v58 = vadd.f32 %v2039_v51, %v1927_v48  ;;  %v1929_v59 = vpop.f32.mrf.mxu0 }
 0x169   : > { %1595 = vst [vmem:[%s2576_s20 + $0xa0] sm:$0xff] %v2289_v55  ;;  %v1930_v60 = vadd.f32 %v1929_v59, %v1928_v52  ;;  %v2041_v61 = vpop.f32.mrf.mxu1 }
 0x16a   : > { %2302 = vrcp.f32 %v1503_v56  ;;  %v1380_v62 = vadd.f32 %v2562_v39, %v1162_v58  ;;  %v2042_v63 = vadd.f32 %v2041_v61, %v2040_v54  ;;  %v1931_v0 = vpop.f32.mrf.mxu0 }
 0x16b   : > { %v2291_v1 = vpop.eup %2290  ;;  %2304 = vpow2.f32 %v1815_v57  ;;  %v2043_v2 = vpop.f32.mrf.mxu1 }
 0x16c   : > { %v2293_v3 = vpop.eup %2292  ;;  %v1504_v4 = vadd.f32 1.0, %v2291_v1  ;;  %v1816_v5 = vmul.f32 -1.442695, %v1380_v62  ;;  %v1167_v6 = vadd.f32 %v2042_v63, %v1930_v60  ;;  %v1932_v7 = vpop.f32.mrf.mxu0 }
 0x16d   : > { %1596 = vst [vmem:[%s2576_s20 + $0xa8] sm:$0xff] %v2293_v3  ;;  %v1933_v8 = vadd.f32 %v1932_v7, %v1931_v0  ;;  %v2044_v9 = vpop.f32.mrf.mxu1 }
 0x16e   : > { %2306 = vrcp.f32 %v1504_v4  ;;  %v1381_v10 = vadd.f32 %v2562_v39, %v1167_v6  ;;  %v2045_v11 = vadd.f32 %v2044_v9, %v2043_v2 }
 0x16f   : > { %v2295_v12 = vpop.eup %2294  ;;  %2308 = vpow2.f32 %v1816_v5 }
 0x170   : > { %v2297_v13 = vpop.eup %2296  ;;  %v1505_v14 = vadd.f32 1.0, %v2295_v12  ;;  %v1817_v15 = vmul.f32 -1.442695, %v1381_v10  ;;  %v1170_v16 = vadd.f32 %v2045_v11, %v1933_v8 }
 0x171   : > { %1597 = vst [vmem:[%s2576_s20 + $0xb0] sm:$0xff] %v2297_v13 }
 0x172   : > { %2310 = vrcp.f32 %v1505_v14  ;;  %v1382_v17 = vadd.f32 %v2562_v39, %v1170_v16 }
 0x173   : > { %v2299_v18 = vpop.eup %2298  ;;  %2312 = vpow2.f32 %v1817_v15 }
 0x174   : > { %v2301_v19 = vpop.eup %2300  ;;  %v1506_v20 = vadd.f32 1.0, %v2299_v18  ;;  %v1818_v21 = vmul.f32 -1.442695, %v1382_v17 }
 0x175   : > { %1598 = vst [vmem:[%s2576_s20 + $0xb8] sm:$0xff] %v2301_v19 }
 0x176   : > { %2314 = vrcp.f32 %v1506_v20 }
 0x177   : > { %v2303_v22 = vpop.eup %2302  ;;  %2316 = vpow2.f32 %v1818_v21 }
 0x178   : > { %v2305_v23 = vpop.eup %2304  ;;  %1599 = vst [vmem:[%s2576_s20 + $0xc0] sm:$0xff] %v2303_v22 }
 0x179   : > { %v1507_v24 = vadd.f32 1.0, %v2305_v23 }
 0x17b   : > { %v2307_v25 = vpop.eup %2306  ;;  %2318 = vrcp.f32 %v1507_v24 }
 0x17c   : > { %v2309_v26 = vpop.eup %2308  ;;  %1600 = vst [vmem:[%s2576_s20 + $0xc8] sm:$0xff] %v2307_v25 }
 0x17d   : > { %v1508_v39 = vadd.f32 1.0, %v2309_v26 }
 0x17f   : > { %v2311_v27 = vpop.eup %2310  ;;  %2320 = vrcp.f32 %v1508_v39 }
 0x180   : > { %v2313_v28 = vpop.eup %2312  ;;  %1601 = vst [vmem:[%s2576_s20 + $0xd0] sm:$0xff] %v2311_v27 }
 0x181   : > { %v1509_v29 = vadd.f32 1.0, %v2313_v28 }
 0x183   : > { %v2315_v30 = vpop.eup %2314  ;;  %2322 = vrcp.f32 %v1509_v29 }
 0x184   : > { %v2317_v31 = vpop.eup %2316  ;;  %1602 = vst [vmem:[%s2576_s20 + $0xd8] sm:$0xff] %v2315_v30 }
 0x185   : > { %v1510_v32 = vadd.f32 1.0, %v2317_v31 }
 0x187   : > { %2324 = vrcp.f32 %v1510_v32 }
 0x188   : > { %v2319_v33 = vpop.eup %2318 }
 0x189   : > { %1603 = vst [vmem:[%s2576_s20 + $0xe0] sm:$0xff] %v2319_v33 }
 0x18c   : > { %v2321_v34 = vpop.eup %2320 }
 0x18d   : > { %1604 = vst [vmem:[%s2576_s20 + $0xe8] sm:$0xff] %v2321_v34 }
 0x190   : > { %v2323_v35 = vpop.eup %2322 }
 0x191   : > { %1605 = vst [vmem:[%s2576_s20 + $0xf0] sm:$0xff] %v2323_v35 }
 0x194   : > { %v2325_v36 = vpop.eup %2324 }
 0x195   : > { %1606 = vst [vmem:[%s2576_s20 + $0xf8] sm:$0xff] %v2325_v36 }
 0x196 PF: > { %s13_s14 = sadd.s32 1, %s2348_s14   ;;  %s2647_s12 = smov %s2344_s13 }
 0x197   : > { %p10_p5 = scmp.ge.s32.totalorder %s13_s14, 4   ;;  %s2648_s13 = smov %s2650_s15 }
 0x199   :  { %12 = sbr.rel (!%p10_p5) target bundleno = 2 (0x2), region = 75 }

// kernel: gcn2_forward.4
= control target key start
LH: loop header
LB: loop body
LE: loop exit
PB: predicated region body
PF: predicated region fallthrough
CT: control target
= control target key end

     0   :  { %s2828_s18 = smov 0   ;;  %s2830_s19 = smov 0   ;;  %s3231_s0 = inlined_call_operand.vmem [shape: bf16[512,512], index: 0, kind: input, shape index: {}]   ;;  %s3232_s1 = inlined_call_operand.vmem [shape: bf16[512,128], index: 1, kind: input, shape index: {}]   ;;  %s3233_s2 = inlined_call_operand.vmem [shape: f32[1,128], index: 2, kind: input, shape index: {}]   ;;  %s3234_s3 = inlined_call_operand.vmem [shape: bf16[128,128], index: 3, kind: input, shape index: {}]   ;;  %s3235_s4 = inlined_call_operand.vmem [shape: f32[512,128], index: 4, kind: output, shape index: {0}]   ;;  %s3236_s5 = inlined_call_operand.vmem [shape: bf16[512,128], index: 5, kind: output, shape index: {1}]  }
   0x1   :  { %s2832_s20 = smov 0  }
   0x2 LB: > { %s28_s21 = sadd.s32 1, %s2792_s19  ;;  %p2027_p0 = scmp.ge.s32.totalorder %s2796_s20, 1  ;;  %s2796_s20 = sphi %s2832_s20, %s16_s20   ;;  %s2792_s19 = sphi %s2830_s19, %s3238_s19   ;;  %s2788_s18 = sphi %s2828_s18, %s3237_s18  }
   0x3   : > { %p30_p1 = scmp.ge.s32.totalorder %s28_s21, 2  ;;  %p211_p2 = scmp.lt.s32.totalorder %s2796_s20, 3 }
   0x5   : > { %s3240_s21 = smov (%p30_p1, %s28_s21), 0  ;;  %p212_p3 = pnand %p2027_p0, %p211_p2 }
   0x6   : > { %s2028_s24 = sshll.u32 (!%p212_p3), %s2788_s18, 5 }
   0x7   : > { %215 = sbr.rel (%p212_p3) target bundleno = 608 (0x260), region = 36  ;;  %p251_p4 = scmp.lt.s32.totalorder (!%p212_p3), %s2028_s24, 63 }
   0xc   : > { %v2638_v0 = vld [vmem:[%s3232_s1 + $0x78] sm:$0xff]   ;;  %v2640_v2 = vld [vmem:[%s3232_s1 + $0x70] sm:$0xff]   ;;  %v2642_v4 = vld [vmem:[%s3232_s1 + $0x68] sm:$0xff]   ;;  %s3242_s24 = smov (!%p251_p4, %s2028_s24), 63 }
   0xd   : > { %v2639_v1 = vld [vmem:[%s3232_s1 + $0x38] sm:$0xff]   ;;  %2598 = vmatprep.subr.bf16.mxu1 %v2638_v0  ;;  %2302 = vmatprep.subr.bf16.mxu0 %v2638_v0  ;;  %v2641_v3 = vld [vmem:[%s3232_s1 + $0x30] sm:$0xff]   ;;  %v2643_v5 = vld [vmem:[%s3232_s1 + $0x28] sm:$0xff]   ;;  %s2174_s14 = sshll.u32 %s3242_s24, 4  ;;  %s2032_s27 = sshll.u32 %s3242_s24, 3 }
   0xe   : > { %2606 = vmatpush3.bf16.msra.mxu1 %v2639_v1  ;;  %2303 = vmatpush3.bf16.msra.mxu0 %v2639_v1  ;;  %v2644_v6 = vld [vmem:[%s3232_s1 + $0x60] sm:$0xff]   ;;  %v2646_v8 = vld [vmem:[%s3232_s1 + $0x58] sm:$0xff]   ;;  %s2879_s22 = scalar_lea.vmem %s3231_s0, %s2174_s14  ;;  %v2648_v10 = vld [vmem:[%s3232_s1 + $0x50] sm:$0xff]   ;;  %s3072_s30 = scalar_lea.vmem %s3235_s4, %s2032_s27 }
   0xf   : > { %2599 = vmatprep.subr.bf16.mxu1 %v2640_v2  ;;  %2304 = vmatprep.subr.bf16.mxu0 %v2640_v2  ;;  %v2645_v7 = vld [vmem:[%s3232_s1 + $0x20] sm:$0xff]   ;;  %v2647_v9 = vld [vmem:[%s3232_s1 + $0x18] sm:$0xff]   ;;  %v2649_v12 = vld [vmem:[%s3232_s1 + $0x10] sm:$0xff]   ;;  %s2034_s6 = sshll.u32 %s3242_s24, 2 }
  0x10   : > { %v2656_v11 = vld [vmem:[%s2879_s22 + $0x184] ss:$16 sps:$4 sm:$0xff]   ;;  %v2650_v13 = vld [vmem:[%s3232_s1 + $0x48] sm:$0xff]   ;;  %v2657_v17 = vld [vmem:[%s3232_s1 + $0xf8] sm:$0xff]   ;;  %s3204_s9 = scalar_lea.vmem %s3236_s5, %s2034_s6 }
  0x11   : > { %1047 = vmatprep.mubr.bf16.mxu1 %v2656_v11  ;;  %v2651_v14 = vld [vmem:[%s3232_s1 + $0x8] sm:$0xff]   ;;  %v2652_v15 = vld [vmem:[%s3232_s1 + $0x40] sm:$0xff]   ;;  %v2658_v19 = vld [vmem:[%s3232_s1 + $0xb8] sm:$0xff]  }
  0x12   : > { %2607 = vmatpush3.bf16.msra.mxu1 %v2641_v3  ;;  %2305 = vmatpush3.bf16.msra.mxu0 %v2641_v3  ;;  %v2653_v16 = vld [vmem:[%s3232_s1] sm:$0xff]   ;;  %v2659_v21 = vld [vmem:[%s3232_s1 + $0xf0] sm:$0xff]   ;;  %v2664_v24 = vld [vmem:[%s3232_s1 + $0xe8] sm:$0xff]  }
  0x13   : > { %2600 = vmatprep.subr.bf16.mxu1 %v2642_v4  ;;  %2306 = vmatprep.subr.bf16.mxu0 %v2642_v4  ;;  %v2654_v18 = vld [vmem:[%s2879_s22 + $0x180] ss:$16 sps:$4 sm:$0xff]   ;;  %v2661_v20 = vld [vmem:[%s2879_s22 + $0x1a4] ss:$16 sps:$4 sm:$0xff]   ;;  %v2665_v25 = vld [vmem:[%s3232_s1 + $0xa8] sm:$0xff]  }
  0x14   : > { %v2660_v22 = vld [vmem:[%s3232_s1 + $0xb0] sm:$0xff]   ;;  %v2666_v28 = vld [vmem:[%s3232_s1 + $0xe0] sm:$0xff]   ;;  %v2671_v33 = vld [vmem:[%s3232_s1 + $0xd8] sm:$0xff]  }
  0x15   : > { %v2663_v23 = vld [vmem:[%s2879_s22 + $0x1a0] ss:$16 sps:$4 sm:$0xff]   ;;  %v2684_v27 = vld [vmem:[%s2879_s22 + $0x4] ss:$16 sps:$4 sm:$0xff]   ;;  %v2672_v36 = vld [vmem:[%s3232_s1 + $0x98] sm:$0xff]  }
  0x16   : > { %2608 = vmatpush3.bf16.msra.mxu1 %v2643_v5  ;;  %2307 = vmatpush3.bf16.msra.mxu0 %v2643_v5  ;;  %v2682_v26 = vld [vmem:[%s2879_s22] ss:$16 sps:$4 sm:$0xff]   ;;  %v2668_v29 = vld [vmem:[%s2879_s22 + $0x1c4] ss:$16 sps:$4 sm:$0xff]   ;;  %v2678_v41 = vld [vmem:[%s3232_s1 + $0xc8] sm:$0xff]  }
  0x17   : > { %2601 = vmatprep.subr.bf16.mxu1 %v2644_v6  ;;  %2308 = vmatprep.subr.bf16.mxu0 %v2644_v6  ;;  %v2688_v30 = vld [vmem:[%s2879_s22 + $0x24] ss:$16 sps:$4 sm:$0xff]   ;;  %v2670_v32 = vld [vmem:[%s2879_s22 + $0x1c0] ss:$16 sps:$4 sm:$0xff]   ;;  %v2679_v44 = vld [vmem:[%s3232_s1 + $0x88] sm:$0xff]  }
  0x18   : > { %951 = vmatprep.mubr.bf16.mxu0 %v2684_v27  ;;  %v2667_v31 = vld [vmem:[%s3232_s1 + $0xa0] sm:$0xff]   ;;  %v2673_v38 = vld [vmem:[%s3232_s1 + $0xd0] sm:$0xff]   ;;  %v2687_v45 = vld [vmem:[%s2879_s22 + $0xc] ss:$16 sps:$4 sm:$0xff]  }
  0x19   : > { %v2692_v34 = vld [vmem:[%s2879_s22 + $0x20] ss:$16 sps:$4 sm:$0xff]   ;;  %v2694_v35 = vld [vmem:[%s2879_s22 + $0x44] ss:$16 sps:$4 sm:$0xff]   ;;  %v2685_v48 = vld [vmem:[%s2879_s22 + $0x8] ss:$16 sps:$4 sm:$0xff]  }
  0x1a   : > { %2609 = vmatpush3.bf16.msra.mxu1 %v2645_v7  ;;  %2309 = vmatpush3.bf16.msra.mxu0 %v2645_v7  ;;  %v2675_v37 = vld [vmem:[%s2879_s22 + $0x1e4] ss:$16 sps:$4 sm:$0xff]   ;;  %v2677_v40 = vld [vmem:[%s2879_s22 + $0x1e0] ss:$16 sps:$4 sm:$0xff]   ;;  %v2690_v51 = vld [vmem:[%s2879_s22 + $0x2c] ss:$16 sps:$4 sm:$0xff]  }
  0x1b   : > { %2602 = vmatprep.subr.bf16.mxu1 %v2646_v8  ;;  %2310 = vmatprep.subr.bf16.mxu0 %v2646_v8  ;;  %v2674_v39 = vld [vmem:[%s3232_s1 + $0x90] sm:$0xff]   ;;  %v2680_v46 = vld [vmem:[%s3232_s1 + $0xc0] sm:$0xff]   ;;  %v2693_v53 = vld [vmem:[%s2879_s22 + $0x28] ss:$16 sps:$4 sm:$0xff]  }
  0x1c   : > { %v2698_v42 = vld [vmem:[%s2879_s22 + $0x40] ss:$16 sps:$4 sm:$0xff]   ;;  %v2700_v43 = vld [vmem:[%s2879_s22 + $0x64] ss:$16 sps:$4 sm:$0xff]   ;;  %v2696_v55 = vld [vmem:[%s2879_s22 + $0x4c] ss:$16 sps:$4 sm:$0xff]  }
  0x1d   : > { %v2681_v47 = vld [vmem:[%s3232_s1 + $0x80] sm:$0xff]   ;;  %v2699_v57 = vld [vmem:[%s2879_s22 + $0x48] ss:$16 sps:$4 sm:$0xff]   ;;  %v2702_v59 = vld [vmem:[%s2879_s22 + $0x6c] ss:$16 sps:$4 sm:$0xff]  }
  0x1e   : > { %2610 = vmatpush3.bf16.msra.mxu1 %v2647_v9  ;;  %2311 = vmatpush3.bf16.msra.mxu0 %v2647_v9  ;;  %v2704_v49 = vld [vmem:[%s2879_s22 + $0x60] ss:$16 sps:$4 sm:$0xff]   ;;  %v2706_v50 = vld [vmem:[%s2879_s22 + $0x84] ss:$16 sps:$4 sm:$0xff]   ;;  %v2705_v61 = vld [vmem:[%s2879_s22 + $0x68] ss:$16 sps:$4 sm:$0xff]  }
  0x1f   : > { %2603 = vmatprep.subr.bf16.mxu1 %v2648_v10  ;;  %2312 = vmatprep.subr.bf16.mxu0 %v2648_v10  ;;  %v2710_v52 = vld [vmem:[%s2879_s22 + $0x80] ss:$16 sps:$4 sm:$0xff]   ;;  %v2712_v54 = vld [vmem:[%s2879_s22 + $0xa4] ss:$16 sps:$4 sm:$0xff]   ;;  %v2708_v63 = vld [vmem:[%s2879_s22 + $0x8c] ss:$16 sps:$4 sm:$0xff]  }
  0x20   : > { %v2716_v56 = vld [vmem:[%s2879_s22 + $0xa0] ss:$16 sps:$4 sm:$0xff]   ;;  %v2718_v58 = vld [vmem:[%s2879_s22 + $0xc4] ss:$16 sps:$4 sm:$0xff]   ;;  %v2711_v1 = vld [vmem:[%s2879_s22 + $0x88] ss:$16 sps:$4 sm:$0xff]  }
  0x21   : > { %v2722_v60 = vld [vmem:[%s2879_s22 + $0xc0] ss:$16 sps:$4 sm:$0xff]   ;;  %v2724_v62 = vld [vmem:[%s2879_s22 + $0xe4] ss:$16 sps:$4 sm:$0xff]   ;;  %v2714_v3 = vld [vmem:[%s2879_s22 + $0xac] ss:$16 sps:$4 sm:$0xff]  }
  0x22   : > { %2611 = vmatpush3.bf16.msra.mxu1 %v2649_v12  ;;  %2313 = vmatpush3.bf16.msra.mxu0 %v2649_v12  ;;  %v2728_v0 = vld [vmem:[%s2879_s22 + $0xe0] ss:$16 sps:$4 sm:$0xff]   ;;  %v2730_v2 = vld [vmem:[%s2879_s22 + $0x104] ss:$16 sps:$4 sm:$0xff]   ;;  %v2717_v5 = vld [vmem:[%s2879_s22 + $0xa8] ss:$16 sps:$4 sm:$0xff]  }
  0x23   : > { %2604 = vmatprep.subr.bf16.mxu1 %v2650_v13  ;;  %2314 = vmatprep.subr.bf16.mxu0 %v2650_v13  ;;  %v2734_v4 = vld [vmem:[%s2879_s22 + $0x100] ss:$16 sps:$4 sm:$0xff]   ;;  %v2736_v6 = vld [vmem:[%s2879_s22 + $0x124] ss:$16 sps:$4 sm:$0xff]   ;;  %v2720_v7 = vld [vmem:[%s2879_s22 + $0xcc] ss:$16 sps:$4 sm:$0xff]  }
  0x24   : > { %v2740_v8 = vld [vmem:[%s2879_s22 + $0x120] ss:$16 sps:$4 sm:$0xff]   ;;  %v2723_v9 = vld [vmem:[%s2879_s22 + $0xc8] ss:$16 sps:$4 sm:$0xff]   ;;  %v2742_v10 = vld [vmem:[%s2879_s22 + $0x144] ss:$16 sps:$4 sm:$0xff]  }
  0x25   : > { %v2726_v11 = vld [vmem:[%s2879_s22 + $0xec] ss:$16 sps:$4 sm:$0xff]   ;;  %v2746_v13 = vld [vmem:[%s2879_s22 + $0x140] ss:$16 sps:$4 sm:$0xff]   ;;  %v2747_v27 = vld [vmem:[%s2879_s22 + $0x148] ss:$16 sps:$4 sm:$0xff]  }
  0x26   : > { %2612 = vmatpush3.bf16.msra.mxu1 %v2651_v14  ;;  %2315 = vmatpush3.bf16.msra.mxu0 %v2651_v14  ;;  %v2766_v12 = vld [vmem:[%s3234_s3 + $0x38] sm:$0xff]  }
  0x27   : > { %2605 = vmatprep.subr.bf16.mxu1 %v2652_v15  ;;  %2316 = vmatprep.subr.bf16.mxu0 %v2652_v15  ;;  %v2729_v14 = vld [vmem:[%s2879_s22 + $0xe8] ss:$16 sps:$4 sm:$0xff]   ;;  %v2748_v15 = vld [vmem:[%s2879_s22 + $0x164] ss:$16 sps:$4 sm:$0xff]  }
  0x2a   : > { %2613 = vmatpush3.bf16.msra.mxu1 %v2653_v16  ;;  %2317 = vmatpush3.bf16.msra.mxu0 %v2653_v16  ;;  %v2732_v16 = vld [vmem:[%s2879_s22 + $0x10c] ss:$16 sps:$4 sm:$0xff]  }
  0x2b   : > { %2414 = vmatprep.subr.bf16.mxu1 %v2657_v17  ;;  %2550 = vmatprep.subr.bf16.mxu0 %v2766_v12  ;;  %v2752_v17 = vld [vmem:[%s2879_s22 + $0x160] ss:$16 sps:$4 sm:$0xff]  }
  0x2d   : > { %1048 = vmatmul.mubr.bf16.vlgmr.msra.gmra.mxu1 %v2654_v18  ;;  %952 = vmatmul.mubr.bf16.vlgmr.msra.gmra.mxu0 %v2682_v26  ;;  %v2767_v18 = vld [vmem:[%s3234_s3 + $0x30] sm:$0xff]  }
  0x2e   : > { %2415 = vmatpush3.bf16.msra.mxu1 %v2658_v19  ;;  %1055 = vmatprep.mubr.bf16.mxu1 %v2661_v20  ;;  %v2735_v19 = vld [vmem:[%s2879_s22 + $0x108] ss:$16 sps:$4 sm:$0xff]   ;;  %v2738_v20 = vld [vmem:[%s2879_s22 + $0x12c] ss:$16 sps:$4 sm:$0xff]   ;;  %v2771_v26 = vld [vmem:[%s3234_s3 + $0x10] sm:$0xff]  }
  0x2f   : > { %2416 = vmatprep.subr.bf16.mxu1 %v2659_v21  ;;  %959 = vmatprep.mubr.bf16.mxu0 %v2688_v30  ;;  %v2768_v21 = vld [vmem:[%s3234_s3 + $0x28] sm:$0xff]   ;;  %v2773_v30 = vld [vmem:[%s3234_s3] sm:$0xff]  }
  0x30   : > { %2551 = vmatpush3.bf16.msra.mxu0 %v2766_v12 }
  0x31   : > { %2552 = vmatprep.subr.bf16.mxu0 %v2767_v18 }
  0x32   : > { %2417 = vmatpush3.bf16.msra.mxu1 %v2660_v22  ;;  %v2769_v22 = vld [vmem:[%s3234_s3 + $0x20] sm:$0xff]  }
  0x33   : > { %2418 = vmatprep.subr.bf16.mxu1 %v2664_v24  ;;  %v2744_v24 = vld [vmem:[%s2879_s22 + $0x14c] ss:$16 sps:$4 sm:$0xff]  }
  0x34   : > { %2553 = vmatpush3.bf16.msra.mxu0 %v2767_v18 }
  0x35   : > { %1056 = vmatmul.mubr.bf16.gmra.mxu1 %v2663_v23  ;;  %960 = vmatmul.mubr.bf16.gmra.mxu0 %v2692_v34  ;;  %v2741_v23 = vld [vmem:[%s2879_s22 + $0x128] ss:$16 sps:$4 sm:$0xff]   ;;  %v2757_v34 = vld [vmem:[%s2879_s22 + $0x1ac] ss:$16 sps:$4 sm:$0xff]  }
  0x36   : > { %2419 = vmatpush3.bf16.msra.mxu1 %v2665_v25  ;;  %1063 = vmatprep.mubr.bf16.mxu1 %v2668_v29  ;;  %v2770_v25 = vld [vmem:[%s3234_s3 + $0x18] sm:$0xff]   ;;  %v2772_v29 = vld [vmem:[%s3234_s3 + $0x8] sm:$0xff]  }
  0x37   : > { %2420 = vmatprep.subr.bf16.mxu1 %v2666_v28  ;;  %967 = vmatprep.mubr.bf16.mxu0 %v2694_v35  ;;  %v2750_v28 = vld [vmem:[%s2879_s22 + $0x16c] ss:$16 sps:$4 sm:$0xff]   ;;  %v2759_v35 = vld [vmem:[%s2879_s22 + $0x1a8] ss:$16 sps:$4 sm:$0xff]  }
  0x38   : > { %2554 = vmatprep.subr.bf16.mxu0 %v2768_v21 }
  0x39   : > { %2555 = vmatpush3.bf16.msra.mxu0 %v2768_v21 }
  0x3a   : > { %2421 = vmatpush3.bf16.msra.mxu1 %v2667_v31  ;;  %2556 = vmatprep.subr.bf16.mxu0 %v2769_v22  ;;  %v2753_v31 = vld [vmem:[%s2879_s22 + $0x168] ss:$16 sps:$4 sm:$0xff]  }
  0x3b   : > { %2422 = vmatprep.subr.bf16.mxu1 %v2671_v33  ;;  %v2756_v33 = vld [vmem:[%s2879_s22 + $0x188] ss:$16 sps:$4 sm:$0xff]  }
  0x3d   : > { %1064 = vmatmul.mubr.bf16.gmra.mxu1 %v2670_v32  ;;  %968 = vmatmul.mubr.bf16.gmra.mxu0 %v2698_v42  ;;  %v2754_v32 = vld [vmem:[%s2879_s22 + $0x18c] ss:$16 sps:$4 sm:$0xff]  }
  0x3e   : > { %2423 = vmatpush3.bf16.msra.mxu1 %v2672_v36  ;;  %1071 = vmatprep.mubr.bf16.mxu1 %v2675_v37  ;;  %v2760_v36 = vld [vmem:[%s2879_s22 + $0x1cc] ss:$16 sps:$4 sm:$0xff]   ;;  %v2762_v37 = vld [vmem:[%s2879_s22 + $0x1c8] ss:$16 sps:$4 sm:$0xff]  }
  0x3f   : > { %2424 = vmatprep.subr.bf16.mxu1 %v2673_v38  ;;  %975 = vmatprep.mubr.bf16.mxu0 %v2700_v43  ;;  %v2763_v38 = vld [vmem:[%s2879_s22 + $0x1ec] ss:$16 sps:$4 sm:$0xff]  }
  0x40   : > { %2557 = vmatpush3.bf16.msra.mxu0 %v2769_v22 }
  0x41   : > { %2558 = vmatprep.subr.bf16.mxu0 %v2770_v25 }
  0x42   : > { %2425 = vmatpush3.bf16.msra.mxu1 %v2674_v39  ;;  %v2765_v39 = vld [vmem:[%s2879_s22 + $0x1e8] ss:$16 sps:$4 sm:$0xff]  }
  0x43   : > { %2426 = vmatprep.subr.bf16.mxu1 %v2678_v41 }
  0x44   : > { %2559 = vmatpush3.bf16.msra.mxu0 %v2770_v25 }
  0x45   : > { %1072 = vmatmul.mubr.bf16.gmra.mxu1 %v2677_v40  ;;  %976 = vmatmul.mubr.bf16.gmra.mxu0 %v2704_v49 }
  0x46   : > { %2427 = vmatpush3.bf16.msra.mxu1 %v2679_v44  ;;  %1112 = vmatprep.mubr.bf16.mxu1 %v2687_v45 }
  0x47   : > { %2428 = vmatprep.subr.bf16.mxu1 %v2680_v46  ;;  %983 = vmatprep.mubr.bf16.mxu0 %v2706_v50 }
  0x48   : > { %2560 = vmatprep.subr.bf16.mxu0 %v2771_v26 }
  0x49   : > { %2561 = vmatpush3.bf16.msra.mxu0 %v2771_v26 }
  0x4a   : > { %2429 = vmatpush3.bf16.msra.mxu1 %v2681_v47  ;;  %2562 = vmatprep.subr.bf16.mxu0 %v2772_v29 }
  0x4d   : > { %1113 = vmatmul.mubr.bf16.vlgmr.msra.gmra.mxu1 %v2685_v48  ;;  %984 = vmatmul.mubr.bf16.gmra.mxu0 %v2710_v52 }
  0x4e   : > { %1120 = vmatprep.mubr.bf16.mxu1 %v2690_v51  ;;  %991 = vmatprep.mubr.bf16.mxu0 %v2712_v54 }
  0x4f   : > { %2563 = vmatpush3.bf16.msra.mxu0 %v2772_v29 }
  0x50   : > { %2564 = vmatprep.subr.bf16.mxu0 %v2773_v30 }
  0x53   : > { %2565 = vmatpush3.bf16.msra.mxu0 %v2773_v30 }
  0x55   : > { %1121 = vmatmul.mubr.bf16.gmra.mxu1 %v2693_v53  ;;  %992 = vmatmul.mubr.bf16.gmra.mxu0 %v2716_v56 }
  0x56   : > { %1128 = vmatprep.mubr.bf16.mxu1 %v2696_v55  ;;  %999 = vmatprep.mubr.bf16.mxu0 %v2718_v58 }
  0x5d   : > { %1129 = vmatmul.mubr.bf16.gmra.mxu1 %v2699_v57  ;;  %1000 = vmatmul.mubr.bf16.gmra.mxu0 %v2722_v60 }
  0x5e   : > { %1136 = vmatprep.mubr.bf16.mxu1 %v2702_v59  ;;  %1007 = vmatprep.mubr.bf16.mxu0 %v2724_v62 }
  0x65   : > { %1137 = vmatmul.mubr.bf16.gmra.mxu1 %v2705_v61  ;;  %1008 = vmatmul.mubr.bf16.gmra.mxu0 %v2728_v0 }
  0x66   : > { %1144 = vmatprep.mubr.bf16.mxu1 %v2708_v63  ;;  %1015 = vmatprep.mubr.bf16.mxu0 %v2730_v2 }
  0x6d   : > { %1145 = vmatmul.mubr.bf16.gmra.mxu1 %v2711_v1  ;;  %1016 = vmatmul.mubr.bf16.gmra.mxu0 %v2734_v4 }
  0x6e   : > { %1152 = vmatprep.mubr.bf16.mxu1 %v2714_v3  ;;  %1023 = vmatprep.mubr.bf16.mxu0 %v2736_v6 }
  0x75   : > { %1153 = vmatmul.mubr.bf16.gmra.mxu1 %v2717_v5  ;;  %1024 = vmatmul.mubr.bf16.gmra.mxu0 %v2740_v8 }
  0x76   : > { %1160 = vmatprep.mubr.bf16.mxu1 %v2720_v7  ;;  %1031 = vmatprep.mubr.bf16.mxu0 %v2742_v10 }
  0x7d   : > { %1161 = vmatmul.mubr.bf16.gmra.mxu1 %v2723_v9  ;;  %1032 = vmatmul.mubr.bf16.gmra.mxu0 %v2746_v13 }
  0x7e   : > { %1168 = vmatprep.mubr.bf16.mxu1 %v2726_v11  ;;  %1039 = vmatprep.mubr.bf16.mxu0 %v2748_v15 }
  0x85   : > { %1169 = vmatmul.mubr.bf16.gmra.mxu1 %v2729_v14  ;;  %1040 = vmatmul.mubr.bf16.gmra.mxu0 %v2752_v17 }
  0x86   : > { %1176 = vmatprep.mubr.bf16.mxu1 %v2732_v16 }
  0x8d   : > { %1177 = vmatmul.mubr.bf16.gmra.mxu1 %v2735_v19  ;;  %v3061_v19 = vld [vmem:[%s3233_s2] ss:$0 sm:$0xff] }
  0x8e   : > { %1184 = vmatprep.mubr.bf16.mxu1 %v2738_v20 }
  0x95   : > { %1185 = vmatmul.mubr.bf16.gmra.mxu1 %v2741_v23 }
  0x96   : > { %1192 = vmatprep.mubr.bf16.mxu1 %v2744_v24 }
  0x9d   : > { %1193 = vmatmul.mubr.bf16.gmra.mxu1 %v2747_v27 }
  0x9e   : > { %1200 = vmatprep.mubr.bf16.mxu1 %v2750_v28 }
  0xa5   : > { %1201 = vmatmul.mubr.bf16.gmra.mxu1 %v2753_v31 }
  0xa6   : > { %1208 = vmatprep.mubr.bf16.mxu1 %v2754_v32 }
  0xad   : > { %1209 = vmatmul.mubr.bf16.gmra.mxu1 %v2756_v33 }
  0xae   : > { %1216 = vmatprep.mubr.bf16.mxu1 %v2757_v34 }
  0xb5   : > { %1217 = vmatmul.mubr.bf16.gmra.mxu1 %v2759_v35 }
  0xb6   : > { %1224 = vmatprep.mubr.bf16.mxu1 %v2760_v36 }
  0xbd   : > { %1225 = vmatmul.mubr.bf16.gmra.mxu1 %v2762_v37 }
  0xbe   : > { %1232 = vmatprep.mubr.bf16.mxu1 %v2763_v38 }
  0xc5   : > { %1233 = vmatmul.mubr.bf16.gmra.mxu1 %v2765_v39 }
  0xed   : > { %v2390_v40 = vpop.f32.mrf.mxu1  ;;  %v2318_v46 = vpop.f32.mrf.mxu0 }
  0xef   : > { %v2391_v41 = vpop.f32.mrf.mxu1  ;;  %v2319_v48 = vpop.f32.mrf.mxu0 }
  0xf0   : > { %v3038_v42 = vadd.f32 %v2391_v41, %v2390_v40  ;;  %v2320_v14 = vadd.f32 %v2319_v48, %v2318_v46 }
  0xf1   : > { %v2393_v43 = vpop.f32.mrf.mxu1  ;;  %v2321_v51 = vpop.f32.mrf.mxu0 }
  0xf3   : > { %v2394_v44 = vpop.f32.mrf.mxu1  ;;  %v2322_v53 = vpop.f32.mrf.mxu0 }
  0xf4   : > { %v3040_v45 = vadd.f32 %v2394_v44, %v2393_v43  ;;  %v2323_v22 = vadd.f32 %v2322_v53, %v2321_v51 }
  0xf5   : > { %v2396_v47 = vpop.f32.mrf.mxu1  ;;  %v2324_v56 = vpop.f32.mrf.mxu0 }
  0xf7   : > { %v2397_v49 = vpop.f32.mrf.mxu1  ;;  %v2325_v58 = vpop.f32.mrf.mxu0 }
  0xf8   : > { %v3042_v50 = vadd.f32 %v2397_v49, %v2396_v47  ;;  %v2326_v31 = vadd.f32 %v2325_v58, %v2324_v56 }
  0xf9   : > { %v2399_v52 = vpop.f32.mrf.mxu1  ;;  %v2327_v61 = vpop.f32.mrf.mxu0 }
  0xfb   : > { %v2400_v54 = vpop.f32.mrf.mxu1  ;;  %v2328_v63 = vpop.f32.mrf.mxu0 }
  0xfc   : > { %v3044_v55 = vadd.f32 %v2400_v54, %v2399_v52  ;;  %v2329_v40 = vadd.f32 %v2328_v63, %v2327_v61 }
  0xfd   : > { %v2402_v57 = vpop.f32.mrf.mxu1  ;;  %v2330_v2 = vpop.f32.mrf.mxu0 }
  0xff   : > { %v2403_v59 = vpop.f32.mrf.mxu1  ;;  %v2331_v4 = vpop.f32.mrf.mxu0 }
 0x100   : > { %v3046_v60 = vadd.f32 %v2403_v59, %v2402_v57  ;;  %v2332_v53 = vadd.f32 %v2331_v4, %v2330_v2 }
 0x101   : > { %v2405_v62 = vpop.f32.mrf.mxu1  ;;  %v2333_v7 = vpop.f32.mrf.mxu0 }
 0x103   : > { %v2406_v0 = vpop.f32.mrf.mxu1  ;;  %v2334_v9 = vpop.f32.mrf.mxu0 }
 0x104   : > { %v3048_v1 = vadd.f32 %v2406_v0, %v2405_v62  ;;  %v2335_v0 = vadd.f32 %v2334_v9, %v2333_v7 }
 0x105   : > { %v2408_v3 = vpop.f32.mrf.mxu1  ;;  %v3054_v12 = vpop.f32.mrf.mxu0 }
 0x107   : > { %v2409_v5 = vpop.f32.mrf.mxu1  ;;  %v2337_v15 = vpop.f32.mrf.mxu0 }
 0x108   : > { %v3050_v6 = vadd.f32 %v2409_v5, %v2408_v3 }
 0x109   : > { %v2411_v8 = vpop.f32.mrf.mxu1  ;;  %v3056_v18 = vpop.f32.mrf.mxu0 }
 0x10b   : > { %v2412_v10 = vpop.f32.mrf.mxu1  ;;  %v3064_v23 = vpop.f32.mrf.mxu0 }
 0x10c   : > { %v3052_v11 = vadd.f32 %v2412_v10, %v2411_v8 }
 0x10d   : > { %v2430_v13 = vpop.f32.mrf.mxu1  ;;  %v3067_v27 = vpop.f32.mrf.mxu0 }
 0x10f   : > { %v2431_v16 = vpop.f32.mrf.mxu1  ;;  %v3074_v32 = vpop.f32.mrf.mxu0 }
 0x110   : > { %v2432_v17 = vadd.f32 %v2431_v16, %v2430_v13 }
 0x111   : > { %v2433_v20 = vpop.f32.mrf.mxu1  ;;  %v3078_v36 = vpop.f32.mrf.mxu0 }
 0x112   : > { %v1115_v21 = vadd.f32 %v2432_v17, %v2320_v14  ;;  %v2338_v17 = vadd.f32 %v2337_v15, %v3054_v12 }
 0x113   : > { %v2434_v24 = vpop.f32.mrf.mxu1  ;;  %v3080_v41 = vpop.f32.mrf.mxu0 }
 0x114   : > { %v1419_v25 = vadd.f32 %v3061_v19, %v1115_v21  ;;  %v2435_v26 = vadd.f32 %v2434_v24, %v2433_v20 }
 0x115   : > { %v2436_v28 = vpop.f32.mrf.mxu1  ;;  %v3084_v48 = vpop.f32.mrf.mxu0 }
 0x116   : > { %v1451_v29 = vmax.f32 %v1419_v25, 0.0  ;;  %v1118_v30 = vadd.f32 %v2435_v26, %v2323_v22 }
 0x117   : > { %v2437_v33 = vpop.f32.mrf.mxu1  ;;  %v3086_v54 = vpop.f32.mrf.mxu0 }
 0x118   : > { %1483 = vst [vmem:[%s3072_s30] sm:$0xff] %v1451_v29  ;;  %v1420_v34 = vadd.f32 %v3061_v19, %v1118_v30  ;;  %v2438_v35 = vadd.f32 %v2437_v33, %v2436_v28  ;;  %v2341_v28 = vadd.f32 %v3064_v23, %v3056_v18 }
 0x119   : > { %v2439_v37 = vpop.f32.mrf.mxu1  ;;  %v3090_v59 = vpop.f32.mrf.mxu0 }
 0x11a   : > { %v1452_v38 = vmax.f32 %v1420_v34, 0.0  ;;  %v1123_v39 = vadd.f32 %v2438_v35, %v2326_v31 }
 0x11b   : > { %v2440_v43 = vpop.f32.mrf.mxu1  ;;  %v3092_v3 = vpop.f32.mrf.mxu0 }
 0x11c   : > { %1484 = vst [vmem:[%s3072_s30 + $0x8] sm:$0xff] %v1452_v38  ;;  %v1421_v44 = vadd.f32 %v3061_v19, %v1123_v39  ;;  %v2441_v46 = vadd.f32 %v2440_v43, %v2439_v37  ;;  %v1515_v47 = vpack.c.bf16 %v1452_v38, %v1451_v29  ;;  %v2344_v38 = vadd.f32 %v3074_v32, %v3067_v27 }
 0x11d   : > { %v2442_v49 = vpop.f32.mrf.mxu1  ;;  %v3096_v10 = vpop.f32.mrf.mxu0 }
 0x11e   : > { %v1453_v51 = vmax.f32 %v1421_v44, 0.0  ;;  %v1126_v52 = vadd.f32 %v2441_v46, %v2329_v40  ;;  %2566 = vmatprep.mubr.bf16.mxu0 %v1515_v47 }
 0x11f   : > { %v2443_v56 = vpop.f32.mrf.mxu1  ;;  %v3099_v20 = vpop.f32.mrf.mxu0 }
 0x120   : > { %1485 = vst [vmem:[%s3072_s30 + $0x10] sm:$0xff] %v1453_v51  ;;  %v1422_v57 = vadd.f32 %v3061_v19, %v1126_v52  ;;  %v2444_v58 = vadd.f32 %v2443_v56, %v2442_v49  ;;  %v2347_v49 = vadd.f32 %v3080_v41, %v3078_v36 }
 0x121   : > { %v2445_v61 = vpop.f32.mrf.mxu1  ;;  %v3103_v22 = vpop.f32.mrf.mxu0 }
 0x122   : > { %v1454_v62 = vmax.f32 %v1422_v57, 0.0  ;;  %v1131_v63 = vadd.f32 %v2444_v58, %v2332_v53 }
 0x123   : > { %v2446_v5 = vpop.f32.mrf.mxu1  ;;  %v3107_v29 = vpop.f32.mrf.mxu0 }
 0x124   : > { %1486 = vst [vmem:[%s3072_s30 + $0x18] sm:$0xff] %v1454_v62  ;;  %v1516_v8 = vpack.c.bf16 %v1454_v62, %v1453_v51  ;;  %v1423_v2 = vadd.f32 %v3061_v19, %v1131_v63  ;;  %v2447_v4 = vadd.f32 %v2446_v5, %v2445_v61  ;;  %v2350_v62 = vadd.f32 %v3086_v54, %v3084_v48 }
 0x125   : > { %v2448_v13 = vpop.f32.mrf.mxu1  ;;  %v3111_v33 = vpop.f32.mrf.mxu0 }
 0x126   : > { %v1455_v14 = vmax.f32 %v1423_v2, 0.0  ;;  %v1134_v16 = vadd.f32 %v2447_v4, %v2335_v0  ;;  %2567 = vmatmul.mubr.bf16.vlgmr.msra.gmra.mxu0 %v1516_v8 }
 0x127   : > { %v2449_v7 = vpop.f32.mrf.mxu1  ;;  %v3115_v39 = vpop.f32.mrf.mxu0 }
 0x128   : > { %1487 = vst [vmem:[%s3072_s30 + $0x20] sm:$0xff] %v1455_v14  ;;  %v1424_v9 = vadd.f32 %v3061_v19, %v1134_v16  ;;  %v2450_v21 = vadd.f32 %v2449_v7, %v2448_v13  ;;  %v2353_v13 = vadd.f32 %v3092_v3, %v3090_v59 }
 0x129   : > { %v2451_v24 = vpop.f32.mrf.mxu1  ;;  %v3119_v43 = vpop.f32.mrf.mxu0 }
 0x12a   : > { %v1456_v25 = vmax.f32 %v1424_v9, 0.0  ;;  %v1139_v26 = vadd.f32 %v2450_v21, %v2338_v17 }
 0x12b   : > { %v2452_v30 = vpop.f32.mrf.mxu1  ;;  %v2364_v51 = vpop.f32.mrf.mxu0 }
 0x12c   : > { %1488 = vst [vmem:[%s3072_s30 + $0x28] sm:$0xff] %v1456_v25  ;;  %v1425_v12 = vadd.f32 %v3061_v19, %v1139_v26  ;;  %v2453_v15 = vadd.f32 %v2452_v30, %v2451_v24  ;;  %v1517_v31 = vpack.c.bf16 %v1456_v25, %v1455_v14  ;;  %v2356_v25 = vadd.f32 %v3099_v20, %v3096_v10 }
 0x12d   : > { %v2454_v34 = vpop.f32.mrf.mxu1  ;;  %v3125_v56 = vpop.f32.mrf.mxu0 }
 0x12e   : > { %v1457_v35 = vmax.f32 %v1425_v12, 0.0  ;;  %v1142_v37 = vadd.f32 %v2453_v15, %v2341_v28  ;;  %2570 = vmatprep.mubr.bf16.mxu0 %v1517_v31  ;;  %v2359_v31 = vadd.f32 %v3107_v29, %v3103_v22 }
 0x12f   : > { %v2455_v18 = vpop.f32.mrf.mxu1  ;;  %v2367_v63 = vpop.f32.mrf.mxu0 }
 0x130   : > { %1489 = vst [vmem:[%s3072_s30 + $0x30] sm:$0xff] %v1457_v35  ;;  %v1426_v23 = vadd.f32 %v3061_v19, %v1142_v37  ;;  %v2456_v40 = vadd.f32 %v2455_v18, %v2454_v34 }
 0x131   : > { %v2457_v44 = vpop.f32.mrf.mxu1  ;;  %v3131_v5 = vpop.f32.mrf.mxu0 }
 0x132   : > { %v1458_v46 = vmax.f32 %v1426_v23, 0.0  ;;  %v1147_v47 = vadd.f32 %v2456_v40, %v2344_v38  ;;  %v2362_v40 = vadd.f32 %v3115_v39, %v3111_v33 }
 0x133   : > { %v2458_v52 = vpop.f32.mrf.mxu1  ;;  %v2370_v14 = vpop.f32.mrf.mxu0 }
 0x134   : > { %1490 = vst [vmem:[%s3072_s30 + $0x38] sm:$0xff] %v1458_v46  ;;  %v1427_v27 = vadd.f32 %v3061_v19, %v1147_v47  ;;  %v2459_v32 = vadd.f32 %v2458_v52, %v2457_v44  ;;  %v1518_v53 = vpack.c.bf16 %v1458_v46, %v1457_v35 }
 0x135   : > { %v2460_v57 = vpop.f32.mrf.mxu1  ;;  %v3137_v7 = vpop.f32.mrf.mxu0 }
 0x136   : > { %v1459_v58 = vmax.f32 %v1427_v27, 0.0  ;;  %v1150_v61 = vadd.f32 %v2459_v32, %v2347_v49  ;;  %2571 = vmatmul.mubr.bf16.gmra.mxu0 %v1518_v53  ;;  %v2365_v27 = vadd.f32 %v2364_v51, %v3119_v43 }
 0x137   : > { %v2461_v0 = vpop.f32.mrf.mxu1  ;;  %v2373_v28 = vpop.f32.mrf.mxu0 }
 0x138   : > { %1491 = vst [vmem:[%s3072_s30 + $0x40] sm:$0xff] %v1459_v58  ;;  %v1428_v36 = vadd.f32 %v3061_v19, %v1150_v61  ;;  %v2462_v41 = vadd.f32 %v2461_v0, %v2460_v57  ;;  %v2368_v0 = vadd.f32 %v2367_v63, %v3125_v56 }
 0x139   : > { %v2463_v8 = vpop.f32.mrf.mxu1  ;;  %v2375_v35 = vpop.f32.mrf.mxu0 }
 0x13a   : > { %v1460_v2 = vmax.f32 %v1428_v36, 0.0  ;;  %v1155_v4 = vadd.f32 %v2462_v41, %v2350_v62 }
 0x13b   : > { %v2464_v16 = vpop.f32.mrf.mxu1  ;;  %v2376_v46 = vpop.f32.mrf.mxu0 }
 0x13c   : > { %1492 = vst [vmem:[%s3072_s30 + $0x48] sm:$0xff] %v1460_v2  ;;  %v1429_v48 = vadd.f32 %v3061_v19, %v1155_v4  ;;  %v2465_v54 = vadd.f32 %v2464_v16, %v2463_v8  ;;  %v1519_v17 = vpack.c.bf16 %v1460_v2, %v1459_v58 }
 0x13d   : > { %v2466_v9 = vpop.f32.mrf.mxu1  ;;  %v2378_v53 = vpop.f32.mrf.mxu0 }
 0x13e   : > { %v1461_v21 = vmax.f32 %v1429_v48, 0.0  ;;  %v1158_v24 = vadd.f32 %v2465_v54, %v2353_v13  ;;  %2574 = vmatprep.mubr.bf16.mxu0 %v1519_v17  ;;  %v2371_v13 = vadd.f32 %v2370_v14, %v3131_v5 }
 0x13f   : > { %v2467_v26 = vpop.f32.mrf.mxu1  ;;  %v2379_v41 = vpop.f32.mrf.mxu0 }
 0x140   : > { %1493 = vst [vmem:[%s3072_s30 + $0x50] sm:$0xff] %v1461_v21  ;;  %v1430_v59 = vadd.f32 %v3061_v19, %v1158_v24  ;;  %v2468_v3 = vadd.f32 %v2467_v26, %v2466_v9  ;;  %v2374_v24 = vadd.f32 %v2373_v28, %v3137_v7 }
 0x141   : > { %v2469_v30 = vpop.f32.mrf.mxu1  ;;  %v2381_v48 = vpop.f32.mrf.mxu0 }
 0x142   : > { %v1462_v12 = vmax.f32 %v1430_v59, 0.0  ;;  %v1163_v15 = vadd.f32 %v2468_v3, %v2356_v25 }
 0x143   : > { %v2470_v34 = vpop.f32.mrf.mxu1  ;;  %v2382_v26 = vpop.f32.mrf.mxu0 }
 0x144   : > { %1494 = vst [vmem:[%s3072_s30 + $0x58] sm:$0xff] %v1462_v12  ;;  %v1431_v37 = vadd.f32 %v3061_v19, %v1163_v15  ;;  %v2471_v38 = vadd.f32 %v2470_v34, %v2469_v30  ;;  %v1520_v10 = vpack.c.bf16 %v1462_v12, %v1461_v21  ;;  %v2377_v12 = vadd.f32 %v2376_v46, %v2375_v35 }
 0x145   : > { %v2472_v20 = vpop.f32.mrf.mxu1 }
 0x146   : > { %v1463_v18 = vmax.f32 %v1431_v37, 0.0  ;;  %v1166_v23 = vadd.f32 %v2471_v38, %v2359_v31  ;;  %2575 = vmatmul.mubr.bf16.gmra.mxu0 %v1520_v10  ;;  %v2384_v31 = vpop.f32.mrf.mxu0 }
 0x147   : > { %v2473_v44 = vpop.f32.mrf.mxu1 }
 0x148   : > { %1495 = vst [vmem:[%s3072_s30 + $0x60] sm:$0xff] %v1463_v18  ;;  %v1432_v22 = vadd.f32 %v3061_v19, %v1166_v23  ;;  %v2474_v29 = vadd.f32 %v2473_v44, %v2472_v20  ;;  %v2380_v20 = vadd.f32 %v2379_v41, %v2378_v53  ;;  %v2385_v23 = vpop.f32.mrf.mxu0 }
 0x149   : > { %v2475_v47 = vpop.f32.mrf.mxu1 }
 0x14a   : > { %v1464_v49 = vmax.f32 %v1432_v22, 0.0  ;;  %v1171_v52 = vadd.f32 %v2474_v29, %v2362_v40  ;;  %v2383_v29 = vadd.f32 %v2382_v26, %v2381_v48 }
 0x14b   : > { %v2476_v32 = vpop.f32.mrf.mxu1 }
 0x14c   : > { %1496 = vst [vmem:[%s3072_s30 + $0x68] sm:$0xff] %v1464_v49  ;;  %v1433_v57 = vadd.f32 %v3061_v19, %v1171_v52  ;;  %v2477_v58 = vadd.f32 %v2476_v32, %v2475_v47  ;;  %v1521_v61 = vpack.c.bf16 %v1464_v49, %v1463_v18  ;;  %v2387_v49 = vpop.f32.mrf.mxu0 }
 0x14d   : > { %v2478_v33 = vpop.f32.mrf.mxu1 }
 0x14e   : > { %v1465_v39 = vmax.f32 %v1433_v57, 0.0  ;;  %v1174_v62 = vadd.f32 %v2477_v58, %v2365_v27  ;;  %2578 = vmatprep.mubr.bf16.mxu0 %v1521_v61  ;;  %v2386_v61 = vadd.f32 %v2385_v23, %v2384_v31 }
 0x14f   : > { %v2479_v36 = vpop.f32.mrf.mxu1 }
 0x150   : > { %1497 = vst [vmem:[%s3072_s30 + $0x70] sm:$0xff] %v1465_v39  ;;  %v1434_v8 = vadd.f32 %v3061_v19, %v1174_v62  ;;  %v2480_v43 = vadd.f32 %v2479_v36, %v2478_v33 }
 0x151   : > { %v2481_v51 = vpop.f32.mrf.mxu1 }
 0x152   : > { %v1466_v2 = vmax.f32 %v1434_v8, 0.0  ;;  %v1179_v4 = vadd.f32 %v2480_v43, %v2368_v0 }
 0x153   : > { %v2482_v16 = vpop.f32.mrf.mxu1 }
 0x154   : > { %1498 = vst [vmem:[%s3072_s30 + $0x78] sm:$0xff] %v1466_v2  ;;  %v1435_v54 = vadd.f32 %v3061_v19, %v1179_v4  ;;  %v2483_v17 = vadd.f32 %v2482_v16, %v2481_v51  ;;  %v1522_v9 = vpack.c.bf16 %v1466_v2, %v1465_v39  ;;  %v2388_v39 = vpop.f32.mrf.mxu0 }
 0x155   : > { %v2484_v56 = vpop.f32.mrf.mxu1  ;;  %v2389_v43 = vadd.f32 %v2388_v39, %v2387_v49 }
 0x156   : > { %v1467_v63 = vmax.f32 %v1435_v54, 0.0  ;;  %v1182_v21 = vadd.f32 %v2483_v17, %v2371_v13  ;;  %2579 = vmatmul.mubr.bf16.gmra.mxu0 %v1522_v9 }
 0x157   : > { %v2485_v25 = vpop.f32.mrf.mxu1 }
 0x158   : > { %1499 = vst [vmem:[%s3072_s30 + $0x80] sm:$0xff] %v1467_v63  ;;  %v1436_v59 = vadd.f32 %v3061_v19, %v1182_v21  ;;  %v2486_v5 = vadd.f32 %v2485_v25, %v2484_v56 }
 0x159   : > { %v2487_v14 = vpop.f32.mrf.mxu1 }
 0x15a   : > { %v1468_v3 = vmax.f32 %v1436_v59, 0.0  ;;  %v1187_v30 = vadd.f32 %v2486_v5, %v2374_v24 }
 0x15b   : > { %v2488_v15 = vpop.f32.mrf.mxu1 }
 0x15c   : > { %1500 = vst [vmem:[%s3072_s30 + $0x88] sm:$0xff] %v1468_v3  ;;  %v1437_v34 = vadd.f32 %v3061_v19, %v1187_v30  ;;  %v2489_v37 = vadd.f32 %v2488_v15, %v2487_v14  ;;  %v1523_v38 = vpack.c.bf16 %v1468_v3, %v1467_v63 }
 0x15d   : > { %v2490_v10 = vpop.f32.mrf.mxu1 }
 0x15e   : > { %v1469_v7 = vmax.f32 %v1437_v34, 0.0  ;;  %v1190_v28 = vadd.f32 %v2489_v37, %v2377_v12  ;;  %2582 = vmatprep.mubr.bf16.mxu0 %v1523_v38 }
 0x15f   : > { %v2491_v18 = vpop.f32.mrf.mxu1 }
 0x160   : > { %1501 = vst [vmem:[%s3072_s30 + $0x90] sm:$0xff] %v1469_v7  ;;  %v1438_v40 = vadd.f32 %v3061_v19, %v1190_v28  ;;  %v2492_v44 = vadd.f32 %v2491_v18, %v2490_v10 }
 0x161   : > { %v2493_v35 = vpop.f32.mrf.mxu1 }
 0x162   : > { %v1470_v46 = vmax.f32 %v1438_v40, 0.0  ;;  %v1195_v22 = vadd.f32 %v2492_v44, %v2380_v20 }
 0x163   : > { %v2494_v47 = vpop.f32.mrf.mxu1 }
 0x164   : > { %1502 = vst [vmem:[%s3072_s30 + $0x98] sm:$0xff] %v1470_v46  ;;  %v1439_v52 = vadd.f32 %v3061_v19, %v1195_v22  ;;  %v2495_v27 = vadd.f32 %v2494_v47, %v2493_v35  ;;  %v1524_v32 = vpack.c.bf16 %v1470_v46, %v1469_v7 }
 0x165   : > { %v2496_v53 = vpop.f32.mrf.mxu1 }
 0x166   : > { %v1471_v57 = vmax.f32 %v1439_v52, 0.0  ;;  %v1198_v58 = vadd.f32 %v2495_v27, %v2383_v29  ;;  %2583 = vmatmul.mubr.bf16.gmra.mxu0 %v1524_v32 }
 0x167   : > { %v2497_v33 = vpop.f32.mrf.mxu1 }
 0x168   : > { %1503 = vst [vmem:[%s3072_s30 + $0xa0] sm:$0xff] %v1471_v57  ;;  %v1440_v62 = vadd.f32 %v3061_v19, %v1198_v58  ;;  %v2498_v0 = vadd.f32 %v2497_v33, %v2496_v53 }
 0x169   : > { %v2499_v36 = vpop.f32.mrf.mxu1 }
 0x16a   : > { %v1472_v41 = vmax.f32 %v1440_v62, 0.0  ;;  %v1203_v8 = vadd.f32 %v2498_v0, %v2386_v61 }
 0x16b   : > { %v2500_v51 = vpop.f32.mrf.mxu1 }
 0x16c   : > { %1504 = vst [vmem:[%s3072_s30 + $0xa8] sm:$0xff] %v1472_v41  ;;  %v1441_v2 = vadd.f32 %v3061_v19, %v1203_v8  ;;  %v2501_v4 = vadd.f32 %v2500_v51, %v2499_v36  ;;  %v1525_v13 = vpack.c.bf16 %v1472_v41, %v1471_v57 }
 0x16d   : > { %v2502_v16 = vpop.f32.mrf.mxu1 }
 0x16e   : > { %v1473_v48 = vmax.f32 %v1441_v2, 0.0  ;;  %v1206_v54 = vadd.f32 %v2501_v4, %v2389_v43  ;;  %2586 = vmatprep.mubr.bf16.mxu0 %v1525_v13 }
 0x16f   : > { %v2503_v17 = vpop.f32.mrf.mxu1 }
 0x170   : > { %1505 = vst [vmem:[%s3072_s30 + $0xb0] sm:$0xff] %v1473_v48  ;;  %v1442_v9 = vadd.f32 %v3061_v19, %v1206_v54  ;;  %v2504_v56 = vadd.f32 %v2503_v17, %v2502_v16 }
 0x171   : > { %v2505_v63 = vpop.f32.mrf.mxu1 }
 0x172   : > { %v1474_v21 = vmax.f32 %v1442_v9, 0.0  ;;  %v1211_v24 = vadd.f32 %v2504_v56, %v3038_v42 }
 0x173   : > { %v2506_v25 = vpop.f32.mrf.mxu1 }
 0x174   : > { %1506 = vst [vmem:[%s3072_s30 + $0xb8] sm:$0xff] %v1474_v21  ;;  %v1443_v26 = vadd.f32 %v3061_v19, %v1211_v24  ;;  %v2507_v59 = vadd.f32 %v2506_v25, %v2505_v63  ;;  %v1526_v5 = vpack.c.bf16 %v1474_v21, %v1473_v48 }
 0x175   : > { %v2508_v14 = vpop.f32.mrf.mxu1 }
 0x176   : > { %v1475_v3 = vmax.f32 %v1443_v26, 0.0  ;;  %v1214_v30 = vadd.f32 %v2507_v59, %v3040_v45  ;;  %2587 = vmatmul.mubr.bf16.gmra.mxu0 %v1526_v5 }
 0x177   : > { %v2509_v12 = vpop.f32.mrf.mxu1 }
 0x178   : > { %1507 = vst [vmem:[%s3072_s30 + $0xc0] sm:$0xff] %v1475_v3  ;;  %v1444_v15 = vadd.f32 %v3061_v19, %v1214_v30  ;;  %v2510_v31 = vadd.f32 %v2509_v12, %v2508_v14 }
 0x179   : > { %v2511_v34 = vpop.f32.mrf.mxu1 }
 0x17a   : > { %v1476_v42 = vmax.f32 %v1444_v15, 0.0  ;;  %v1219_v37 = vadd.f32 %v2510_v31, %v3042_v50 }
 0x17b   : > { %v2512_v38 = vpop.f32.mrf.mxu1 }
 0x17c   : > { %1508 = vst [vmem:[%s3072_s30 + $0xc8] sm:$0xff] %v1476_v42  ;;  %v1445_v10 = vadd.f32 %v3061_v19, %v1219_v37  ;;  %v2513_v7 = vadd.f32 %v2512_v38, %v2511_v34  ;;  %v1527_v28 = vpack.c.bf16 %v1476_v42, %v1475_v3 }
 0x17d   : > { %v2514_v20 = vpop.f32.mrf.mxu1 }
 0x17e   : > { %v1477_v45 = vmax.f32 %v1445_v10, 0.0  ;;  %v1222_v18 = vadd.f32 %v2513_v7, %v3044_v55  ;;  %2590 = vmatprep.mubr.bf16.mxu0 %v1527_v28 }
 0x17f   : > { %v2515_v23 = vpop.f32.mrf.mxu1 }
 0x180   : > { %1509 = vst [vmem:[%s3072_s30 + $0xd0] sm:$0xff] %v1477_v45  ;;  %v1446_v40 = vadd.f32 %v3061_v19, %v1222_v18  ;;  %v2516_v44 = vadd.f32 %v2515_v23, %v2514_v20 }
 0x181   : > { %v2517_v35 = vpop.f32.mrf.mxu1 }
 0x182   : > { %v1478_v50 = vmax.f32 %v1446_v40, 0.0  ;;  %v1227_v46 = vadd.f32 %v2516_v44, %v3046_v60 }
 0x183   : > { %v2518_v22 = vpop.f32.mrf.mxu1 }
 0x184   : > { %1510 = vst [vmem:[%s3072_s30 + $0xd8] sm:$0xff] %v1478_v50  ;;  %v1447_v29 = vadd.f32 %v3061_v19, %v1227_v46  ;;  %v2519_v47 = vadd.f32 %v2518_v22, %v2517_v35  ;;  %v1528_v49 = vpack.c.bf16 %v1478_v50, %v1477_v45 }
 0x185   : > { %v2520_v52 = vpop.f32.mrf.mxu1 }
 0x186   : > { %v1479_v55 = vmax.f32 %v1447_v29, 0.0  ;;  %v1230_v27 = vadd.f32 %v2519_v47, %v3048_v1  ;;  %2591 = vmatmul.mubr.bf16.gmra.mxu0 %v1528_v49 }
 0x187   : > { %v2521_v32 = vpop.f32.mrf.mxu1 }
 0x188   : > { %1511 = vst [vmem:[%s3072_s30 + $0xe0] sm:$0xff] %v1479_v55  ;;  %v1448_v53 = vadd.f32 %v3061_v19, %v1230_v27  ;;  %v2522_v57 = vadd.f32 %v2521_v32, %v2520_v52 }
 0x189   : > { %v2523_v60 = vpop.f32.mrf.mxu1 }
 0x18a   : > { %v1480_v58 = vmax.f32 %v1448_v53, 0.0  ;;  %v1235_v61 = vadd.f32 %v2522_v57, %v3050_v6 }
 0x18b   : > { %v2524_v33 = vpop.f32.mrf.mxu1 }
 0x18c   : > { %1512 = vst [vmem:[%s3072_s30 + $0xe8] sm:$0xff] %v1480_v58  ;;  %v1449_v39 = vadd.f32 %v3061_v19, %v1235_v61  ;;  %v2525_v62 = vadd.f32 %v2524_v33, %v2523_v60  ;;  %v1529_v0 = vpack.c.bf16 %v1480_v58, %v1479_v55 }
 0x18e   : > { %v1481_v1 = vmax.f32 %v1449_v39, 0.0  ;;  %v1238_v36 = vadd.f32 %v2525_v62, %v3052_v11  ;;  %2594 = vmatprep.mubr.bf16.mxu0 %v1529_v0 }
 0x190   : > { %1513 = vst [vmem:[%s3072_s30 + $0xf0] sm:$0xff] %v1481_v1  ;;  %v1450_v41 = vadd.f32 %v3061_v19, %v1238_v36 }
 0x192   : > { %v1482_v8 = vmax.f32 %v1450_v41, 0.0 }
 0x194   : > { %1514 = vst [vmem:[%s3072_s30 + $0xf8] sm:$0xff] %v1482_v8  ;;  %v1530_v43 = vpack.c.bf16 %v1482_v8, %v1481_v1 }
 0x196   : > { %2595 = vmatmul.mubr.bf16.gmra.mxu0 %v1530_v43 }
 0x1e6   : > { %v2568_v51 = vpop.f32.mrf.mxu0 }
 0x1e8   : > { %v1629_v6 = vpop.f32.mrf.mxu0 }
 0x1ea   : > { %v2569_v11 = vpop.f32.mrf.mxu0 }
 0x1eb   : > { %v2215_v2 = vpack.c.bf16 %v2569_v11, %v2568_v51 }
 0x1ec   : > { %v1632_v4 = vpop.f32.mrf.mxu0 }
 0x1ed   : > { %2287 = vst [vmem:[%s3204_s9 + $0x8] sm:$0xff] %v2215_v2   ;;  %v2210_v19 = vpack.c.bf16 %v1632_v4, %v1629_v6 }
 0x1ef   : > { %2211 = vst [vmem:[%s3204_s9] sm:$0xff] %v2210_v19  }
 0x1f6   : > { %v2572_v13 = vpop.f32.mrf.mxu0 }
 0x1f8   : > { %v1645_v16 = vpop.f32.mrf.mxu0 }
 0x1fa   : > { %v2573_v48 = vpop.f32.mrf.mxu0 }
 0x1fb   : > { %v2225_v54 = vpack.c.bf16 %v2573_v48, %v2572_v13 }
 0x1fc   : > { %v1648_v17 = vpop.f32.mrf.mxu0 }
 0x1fd   : > { %2289 = vst [vmem:[%s3204_s9 + $0x18] sm:$0xff] %v2225_v54   ;;  %v2220_v9 = vpack.c.bf16 %v1648_v17, %v1645_v16 }
 0x1ff   : > { %2288 = vst [vmem:[%s3204_s9 + $0x10] sm:$0xff] %v2220_v9  }
 0x206   : > { %v2576_v56 = vpop.f32.mrf.mxu0 }
 0x208   : > { %v1661_v63 = vpop.f32.mrf.mxu0 }
 0x20a   : > { %v2577_v21 = vpop.f32.mrf.mxu0 }
 0x20b   : > { %v2235_v24 = vpack.c.bf16 %v2577_v21, %v2576_v56 }
 0x20c   : > { %v1664_v25 = vpop.f32.mrf.mxu0 }
 0x20d   : > { %2291 = vst [vmem:[%s3204_s9 + $0x28] sm:$0xff] %v2235_v24   ;;  %v2230_v26 = vpack.c.bf16 %v1664_v25, %v1661_v63 }
 0x20f   : > { %2290 = vst [vmem:[%s3204_s9 + $0x20] sm:$0xff] %v2230_v26  }
 0x216   : > { %v2580_v59 = vpop.f32.mrf.mxu0 }
 0x218   : > { %v1677_v5 = vpop.f32.mrf.mxu0 }
 0x21a   : > { %v2581_v14 = vpop.f32.mrf.mxu0 }
 0x21b   : > { %v2245_v3 = vpack.c.bf16 %v2581_v14, %v2580_v59 }
 0x21c   : > { %v1680_v30 = vpop.f32.mrf.mxu0 }
 0x21d   : > { %2293 = vst [vmem:[%s3204_s9 + $0x38] sm:$0xff] %v2245_v3   ;;  %v2240_v12 = vpack.c.bf16 %v1680_v30, %v1677_v5 }
 0x21f   : > { %2292 = vst [vmem:[%s3204_s9 + $0x30] sm:$0xff] %v2240_v12  }
 0x226   : > { %v2584_v15 = vpop.f32.mrf.mxu0 }
 0x228   : > { %v1693_v31 = vpop.f32.mrf.mxu0 }
 0x22a   : > { %v2585_v34 = vpop.f32.mrf.mxu0 }
 0x22b   : > { %v2255_v42 = vpack.c.bf16 %v2585_v34, %v2584_v15 }
 0x22c   : > { %v1696_v37 = vpop.f32.mrf.mxu0 }
 0x22d   : > { %2295 = vst [vmem:[%s3204_s9 + $0x48] sm:$0xff] %v2255_v42   ;;  %v2250_v38 = vpack.c.bf16 %v1696_v37, %v1693_v31 }
 0x22f   : > { %2294 = vst [vmem:[%s3204_s9 + $0x40] sm:$0xff] %v2250_v38  }
 0x236   : > { %v2588_v10 = vpop.f32.mrf.mxu0 }
 0x238   : > { %v1709_v7 = vpop.f32.mrf.mxu0 }
 0x23a   : > { %v2589_v28 = vpop.f32.mrf.mxu0 }
 0x23b   : > { %v2265_v20 = vpack.c.bf16 %v2589_v28, %v2588_v10 }
 0x23c   : > { %v1712_v45 = vpop.f32.mrf.mxu0 }
 0x23d   : > { %2297 = vst [vmem:[%s3204_s9 + $0x58] sm:$0xff] %v2265_v20   ;;  %v2260_v18 = vpack.c.bf16 %v1712_v45, %v1709_v7 }
 0x23f   : > { %2296 = vst [vmem:[%s3204_s9 + $0x50] sm:$0xff] %v2260_v18  }
 0x246   : > { %v2592_v23 = vpop.f32.mrf.mxu0 }
 0x248   : > { %v1725_v40 = vpop.f32.mrf.mxu0 }
 0x24a   : > { %v2593_v44 = vpop.f32.mrf.mxu0 }
 0x24b   : > { %v2275_v35 = vpack.c.bf16 %v2593_v44, %v2592_v23 }
 0x24c   : > { %v1728_v50 = vpop.f32.mrf.mxu0 }
 0x24d   : > { %2299 = vst [vmem:[%s3204_s9 + $0x68] sm:$0xff] %v2275_v35   ;;  %v2270_v46 = vpack.c.bf16 %v1728_v50, %v1725_v40 }
 0x24f   : > { %2298 = vst [vmem:[%s3204_s9 + $0x60] sm:$0xff] %v2270_v46  }
 0x256   : > { %v2596_v22 = vpop.f32.mrf.mxu0 }
 0x258   : > { %v1741_v29 = vpop.f32.mrf.mxu0 }
 0x25a   : > { %v2597_v47 = vpop.f32.mrf.mxu0 }
 0x25b   : > { %v2285_v49 = vpack.c.bf16 %v2597_v47, %v2596_v22 }
 0x25c   : > { %v1744_v52 = vpop.f32.mrf.mxu0 }
 0x25d   : > { %2301 = vst [vmem:[%s3204_s9 + $0x78] sm:$0xff] %v2285_v49   ;;  %v2280_v55 = vpack.c.bf16 %v1744_v52, %v1741_v29 }
 0x25f   : > { %2300 = vst [vmem:[%s3204_s9 + $0x70] sm:$0xff] %v2280_v55  }
 0x260 PF: > { %s16_s20 = sadd.s32 1, %s2796_s20   ;;  %s3237_s18 = smov %s2792_s19 }
 0x261   : > { %p13_p5 = scmp.ge.s32.totalorder %s16_s20, 4   ;;  %s3238_s19 = smov %s3240_s21 }
 0x263   :  { %15 = sbr.rel (!%p13_p5) target bundleno = 2 (0x2), region = 91 }

</bundles_post_ra>
